<compile_context>
chip_gen: v6e
topology: v6e:2x2x1
jax: 0.10.0
libtpu: 0.0.40
codegen_flags: <defaults>
</compile_context>

<pallas_src>
import numpy as np
import jax
import jax.numpy as jnp
from jax import lax
from jax.experimental import pallas as pl
from jax.experimental.pallas import tpu as pltpu

LATENT_STATE_TYPE = "gaussian"
LATENT_DIM = 32                       # latent_state_shape = (32,)
OUT_CHANNELS = 2 * LATENT_DIM         # gaussian => 2 * latent dim = 64
IN_CHANNELS = 4
HIDDEN = 32
IMG = 10                              # size_linear_unit(10) -> conv out 8x8
CONV_OUT = IMG - 2                    # 8
P = CONV_OUT * CONV_OUT               # 64 spatial positions
CONV_CH = 16
NUM_LINEAR_UNITS = CONV_CH * P        # 1024
IN_FLAT = IN_CHANNELS * IMG * IMG     # 400
PAD_H = 128                           # lane-padded hidden width
SLAB = 256                            # conv-activation column slab (multiple of 128)
N_SLABS = NUM_LINEAR_UNITS // SLAB    # 4


def _round_up(n, m):
    return ((n + m - 1) // m) * m


# ------------------------- fused Pallas kernel ------------------------------
def fused_kernel(x_ref, wc_ref, bc_ref, w1_ref, b1_ref, w2_ref, b2_ref,
                 w3_ref, b3_ref, out_ref):
    def silu(v):
        # sigmoid(v) == 0.5*(1 + tanh(0.5*v)): a single EUP op per element
        # instead of exp + reciprocal.
        return v * (0.5 * (1.0 + jnp.tanh(0.5 * v)))

    x = x_ref[...]                                        # (bblk, 400) bf16
    acc = jnp.zeros((x.shape[0], PAD_H), jnp.float32)
    # Conv-as-matmul slabbed along its 1024 output columns and fused into fc1:
    # the full (bblk, 1024) activation never hits VMEM; each 256-col slab is
    # SiLU'd in registers and immediately contracted into the fc1 accumulator.
    for s in range(N_SLABS):
        lo, hi = s * SLAB, (s + 1) * SLAB
        a = jnp.dot(x, wc_ref[:, lo:hi], preferred_element_type=jnp.float32)
        a = silu(a + bc_ref[:, lo:hi])
        acc = acc + jnp.dot(a.astype(jnp.bfloat16), w1_ref[lo:hi, :],
                            preferred_element_type=jnp.float32)
    h = silu(acc + b1_ref[...])
    h = silu(jnp.dot(h.astype(jnp.bfloat16), w2_ref[...],
                     preferred_element_type=jnp.float32) + b2_ref[...])
    out_ref[...] = jnp.dot(h.astype(jnp.bfloat16), w3_ref[...],
                           preferred_element_type=jnp.float32) + b3_ref[...]


# ------------------------- weight preparation (ONCE, numpy) -----------------
def prepare_weights(params):
    """Runs once per parameter set, entirely in numpy (no XLA scatter on the
    forward path). Bakes the 3x3 VALID conv + PyTorch nn.Flatten order into a
    dense (400, 1024) matmul weight, pads hidden layers to 128 lanes, and
    casts matmul operands to bf16 (biases stay f32)."""
    conv_w = np.asarray(params["conv_w"], np.float32)        # (16, Cin, 3, 3)
    conv_b = np.asarray(params["conv_b"], np.float32)
    Cout, Cin, KH, KW = conv_w.shape

    # W_exp[ci*100 + (oh+kh)*10 + (ow+kw), co*64 + oh*8 + ow] = conv_w[co,ci,kh,kw]
    co, oh, ow, ci, kh, kw = np.meshgrid(
        np.arange(Cout), np.arange(CONV_OUT), np.arange(CONV_OUT),
        np.arange(Cin), np.arange(KH), np.arange(KW), indexing="ij")
    row_idx = (ci * (IMG * IMG) + (oh + kh) * IMG + (ow + kw)).reshape(-1)
    col_idx = (co * P + oh * CONV_OUT + ow).reshape(-1)
    w_exp = np.zeros((IN_FLAT, NUM_LINEAR_UNITS), np.float32)
    w_exp[row_idx, col_idx] = conv_w[co.reshape(-1), ci.reshape(-1),
                                     kh.reshape(-1), kw.reshape(-1)]
    b_exp = np.repeat(conv_b, P)[None, :]                    # (1, 1024)

    def pad2(w, rows, cols, dtype):
        out = np.zeros((rows, cols), np.float32)
        out[:w.shape[0], :w.shape[1]] = w
        return jnp.asarray(out, dtype)

    return {
        "w_exp": jnp.asarray(w_exp, jnp.bfloat16),                       # (400, 1024)
        "b_exp": jnp.asarray(b_exp, jnp.float32),                        # (1, 1024)
        "w1": pad2(np.asarray(params["fc1_w"], np.float32).T,
                   NUM_LINEAR_UNITS, PAD_H, jnp.bfloat16),               # (1024, 128)
        "b1": pad2(np.asarray(params["fc1_b"], np.float32)[None, :], 1, PAD_H, jnp.float32),
        "w2": pad2(np.asarray(params["fc2_w"], np.float32).T, PAD_H, PAD_H, jnp.bfloat16),
        "b2": pad2(np.asarray(params["fc2_b"], np.float32)[None, :], 1, PAD_H, jnp.float32),
        "w3": pad2(np.asarray(params["fc3_w"], np.float32).T, PAD_H, OUT_CHANNELS, jnp.bfloat16),
        "b3": pad2(np.asarray(params["fc3_b"], np.float32)[None, :], 1, OUT_CHANNELS, jnp.float32),
    }


# ------------------------- glue -------------------------------------------
def get_dist(x, latent_state_type, latent_state_shape, min_std=0.1, max_std=2.0):
    if latent_state_type == "deterministic":
        return x
    elif latent_state_type == "gaussian":
        h = x.shape[1] // 2
        return x[:, :h], jnp.clip(x[:, h:], min_std, max_std)
    elif latent_state_type == "discrete":
        return x.reshape(x.shape[0], *latent_state_shape)


def _choose_block(B, block_b):
    # >= 2 batch blocks (when B allows) so ("parallel",) can shard across
    # v7x's 2 TensorCores; 16-row multiple for bf16 sublane packing; avoids
    # grossly over-padding B (e.g. B=260 -> bblk=144, pad 288, 2 blocks).
    n_blocks = max(2, pl.cdiv(B, block_b))
    return max(16, _round_up(pl.cdiv(B, n_blocks), 16))


def representation_forward(x, prepared, *, block_b=512):
    B = x.shape[0]
    bblk = _choose_block(B, block_b)
    b_pad = _round_up(B, bblk)

    x_flat = x.reshape(B, -1).astype(jnp.bfloat16)           # (B, 400)
    if b_pad != B:
        x_flat = jnp.zeros((b_pad, IN_FLAT), jnp.bfloat16).at[:B].set(x_flat)

    resident = lambda i: (0, 0)        # weights stay in VMEM across batch grid
    out = pl.pallas_call(
        fused_kernel,
        out_shape=jax.ShapeDtypeStruct((b_pad, OUT_CHANNELS), jnp.float32),
        grid=(b_pad // bblk,),
        in_specs=[
            pl.BlockSpec((bblk, IN_FLAT), lambda i: (i, 0)),
            pl.BlockSpec((IN_FLAT, NUM_LINEAR_UNITS), resident),
            pl.BlockSpec((1, NUM_LINEAR_UNITS), resident),
            pl.BlockSpec((NUM_LINEAR_UNITS, PAD_H), resident),
            pl.BlockSpec((1, PAD_H), resident),
            pl.BlockSpec((PAD_H, PAD_H), resident),
            pl.BlockSpec((1, PAD_H), resident),
            pl.BlockSpec((PAD_H, OUT_CHANNELS), resident),
            pl.BlockSpec((1, OUT_CHANNELS), resident),
        ],
        out_specs=pl.BlockSpec((bblk, OUT_CHANNELS), lambda i: (i, 0)),
        compiler_params=pltpu.CompilerParams(
            dimension_semantics=("parallel",),        # megacore split on v7x
            vmem_limit_bytes=48 * 1024 * 1024,        # fits v7x's 64 MiB VMEM
        ),
        # NOTE: weight BlockSpecs could use pipeline_mode=pl.Buffered(1)
        # (constant index_map) but total footprint (<6 MiB bf16) is already
        # far under budget on every generation, so it is left at the default.
    )(x_flat, prepared["w_exp"], prepared["b_exp"], prepared["w1"], prepared["b1"],
      prepared["w2"], prepared["b2"], prepared["w3"], prepared["b3"])

    out = out[:B]                                     # drop batch padding only
    return get_dist(out, LATENT_STATE_TYPE, (LATENT_DIM,))


# ------------------------- pure-JAX f32 reference ---------------------------
def reference_forward(x, params):
    conv = lax.conv_general_dilated(
        x, params["conv_w"], window_strides=(1, 1), padding="VALID",
        dimension_numbers=("NCHW", "OIHW", "NCHW"))
    conv = conv + params["conv_b"][None, :, None, None]
    conv = conv * jax.nn.sigmoid(conv)
    flat = conv.reshape(x.shape[0], -1)               # PyTorch flatten (C,H,W)
    h = flat @ params["fc1_w"].T + params["fc1_b"]
    h = h * jax.nn.sigmoid(h)
    h = h @ params["fc2_w"].T + params["fc2_b"]
    h = h * jax.nn.sigmoid(h)
    out = h @ params["fc3_w"].T + params["fc3_b"]
    return get_dist(out, LATENT_STATE_TYPE, (LATENT_DIM,))


# ------------------------- deterministic params -----------------------------
def init_params(key):
    ks = jax.random.split(key, 8)

    def u(k, shape, fan_in):
        b = 1.0 / np.sqrt(fan_in)
        return jax.random.uniform(k, shape, jnp.float32, -b, b)

    return {
        "conv_w": u(ks[0], (CONV_CH, IN_CHANNELS, 3, 3), IN_CHANNELS * 9),
        "conv_b": u(ks[1], (CONV_CH,), IN_CHANNELS * 9),
        "fc1_w": u(ks[2], (HIDDEN, NUM_LINEAR_UNITS), NUM_LINEAR_UNITS),
        "fc1_b": u(ks[3], (HIDDEN,), NUM_LINEAR_UNITS),
        "fc2_w": u(ks[4], (HIDDEN, HIDDEN), HIDDEN),
        "fc2_b": u(ks[5], (HIDDEN,), HIDDEN),
        "fc3_w": u(ks[6], (OUT_CHANNELS, HIDDEN), HIDDEN),
        "fc3_b": u(ks[7], (OUT_CHANNELS,), HIDDEN),
    }


if __name__ == "__main__":
    key = jax.random.PRNGKey(0)
    pkey, xkey1, xkey2 = jax.random.split(key, 3)
    params = init_params(pkey)
    prepared = prepare_weights(params)   # hoisted: zero per-step cost

    # bf16 matmuls (f32 accumulation) vs f32 reference -> relaxed tolerance.
    TOL = dict(rtol=2e-2, atol=2e-2)

    # Small batch (single grid block).
    x = jax.random.normal(xkey1, (2, IN_CHANNELS, IMG, IMG), jnp.float32)
    mean, std = representation_forward(x, prepared)
    jax.block_until_ready((mean, std))
    ref_mean, ref_std = reference_forward(x, params)
    assert mean.shape == (2, LATENT_DIM) and std.shape == (2, LATENT_DIM)
    assert np.allclose(np.asarray(mean), np.asarray(ref_mean), **TOL)
    assert np.allclose(np.asarray(std), np.asarray(ref_std), **TOL)

    # Larger batch: exercises multi-block grid (megacore path) + batch padding.
    x2 = jax.random.normal(xkey2, (48, IN_CHANNELS, IMG, IMG), jnp.float32)
    mean2, std2 = representation_forward(x2, prepared)
    jax.block_until_ready((mean2, std2))
    ref_mean2, ref_std2 = reference_forward(x2, params)
    assert np.allclose(np.asarray(mean2), np.asarray(ref_mean2), **TOL)
    assert np.allclose(np.asarray(std2), np.asarray(ref_std2), **TOL)

    print("KERNEL_OK")
</pallas_src>

<mosaic_0001>
module attributes {stable_mosaic.version = 11 : i64} {
  func.func @fused_kernel(%arg0: i32, %arg1: memref<16x400xbf16, #tpu.memory_space<vmem>>, %arg2: memref<400x1024xbf16, #tpu.memory_space<vmem>>, %arg3: memref<1x1024xf32, #tpu.memory_space<vmem>>, %arg4: memref<1024x128xbf16, #tpu.memory_space<vmem>>, %arg5: memref<1x128xf32, #tpu.memory_space<vmem>>, %arg6: memref<128x128xbf16, #tpu.memory_space<vmem>>, %arg7: memref<1x128xf32, #tpu.memory_space<vmem>>, %arg8: memref<128x64xbf16, #tpu.memory_space<vmem>>, %arg9: memref<1x64xf32, #tpu.memory_space<vmem>>, %arg10: memref<16x64xf32, #tpu.memory_space<vmem>>) attributes {dimension_semantics = [#tpu.dimension_semantics<parallel>], iteration_bounds = array<i64: 1>, scalar_prefetch = 0 : i64, scratch_operands = 0 : i64, tpu.core_type = #tpu.core_type<tc>, window_params = [{transform_indices = @transform_0, window_bounds = array<i64: 16, 400>}, {pipeline_mode = #tpu.pipeline_mode<synchronous>, transform_indices = @transform_1, window_bounds = array<i64: 400, 1024>}, {pipeline_mode = #tpu.pipeline_mode<synchronous>, transform_indices = @transform_2, window_bounds = array<i64: 1, 1024>}, {pipeline_mode = #tpu.pipeline_mode<synchronous>, transform_indices = @transform_3, window_bounds = array<i64: 1024, 128>}, {pipeline_mode = #tpu.pipeline_mode<synchronous>, transform_indices = @transform_4, window_bounds = array<i64: 1, 128>}, {pipeline_mode = #tpu.pipeline_mode<synchronous>, transform_indices = @transform_5, window_bounds = array<i64: 128, 128>}, {pipeline_mode = #tpu.pipeline_mode<synchronous>, transform_indices = @transform_6, window_bounds = array<i64: 1, 128>}, {pipeline_mode = #tpu.pipeline_mode<synchronous>, transform_indices = @transform_7, window_bounds = array<i64: 128, 64>}, {pipeline_mode = #tpu.pipeline_mode<synchronous>, transform_indices = @transform_8, window_bounds = array<i64: 1, 64>}, {transform_indices = @transform_9, window_bounds = array<i64: 16, 64>}]} {
    %c0 = arith.constant 0 : index
    %c0_0 = arith.constant 0 : index
    %0 = vector.load %arg1[%c0, %c0_0] : memref<16x400xbf16, #tpu.memory_space<vmem>>, vector<16x400xbf16>
    %cst = arith.constant 0.000000e+00 : f32
    %1 = vector.broadcast %cst : f32 to vector<16x128xf32>
    %c0_1 = arith.constant 0 : index
    %c0_2 = arith.constant 0 : index
    %2 = vector.load %arg2[%c0_1, %c0_2] : memref<400x1024xbf16, #tpu.memory_space<vmem>>, vector<400x256xbf16>
    %cst_3 = arith.constant dense<0.000000e+00> : vector<16x256xf32>
    %3 = tpu.matmul %0, %2, %cst_3 {dimension_numbers = #tpu.dot_dimension_numbers<[1], [0], [0], [1], [0, 0, 1, 1], [], []>} : vector<16x400xbf16>, vector<400x256xbf16>, vector<16x256xf32> -> vector<16x256xf32>
    %c0_4 = arith.constant 0 : index
    %c0_5 = arith.constant 0 : index
    %4 = vector.load %arg3[%c0_4, %c0_5] : memref<1x1024xf32, #tpu.memory_space<vmem>>, vector<1x256xf32>
    %5 = vector.broadcast %4 : vector<1x256xf32> to vector<16x256xf32>
    %6 = arith.addf %3, %5 : vector<16x256xf32>
    %cst_6 = arith.constant 5.000000e-01 : f32
    %7 = vector.broadcast %cst_6 : f32 to vector<16x256xf32>
    %8 = arith.mulf %7, %6 : vector<16x256xf32>
    %9 = math.tanh %8 : vector<16x256xf32>
    %cst_7 = arith.constant 1.000000e+00 : f32
    %10 = vector.broadcast %cst_7 : f32 to vector<16x256xf32>
    %11 = arith.addf %10, %9 : vector<16x256xf32>
    %cst_8 = arith.constant 5.000000e-01 : f32
    %12 = vector.broadcast %cst_8 : f32 to vector<16x256xf32>
    %13 = arith.mulf %12, %11 : vector<16x256xf32>
    %14 = arith.mulf %6, %13 : vector<16x256xf32>
    %15 = arith.truncf %14 : vector<16x256xf32> to vector<16x256xbf16>
    %c0_9 = arith.constant 0 : index
    %c0_10 = arith.constant 0 : index
    %16 = vector.load %arg4[%c0_9, %c0_10] : memref<1024x128xbf16, #tpu.memory_space<vmem>>, vector<256x128xbf16>
    %cst_11 = arith.constant dense<0.000000e+00> : vector<16x128xf32>
    %17 = tpu.matmul %15, %16, %cst_11 {dimension_numbers = #tpu.dot_dimension_numbers<[1], [0], [0], [1], [0, 0, 1, 1], [], []>} : vector<16x256xbf16>, vector<256x128xbf16>, vector<16x128xf32> -> vector<16x128xf32>
    %18 = arith.addf %1, %17 : vector<16x128xf32>
    %c0_12 = arith.constant 0 : index
    %c256 = arith.constant 256 : index
    %19 = vector.load %arg2[%c0_12, %c256] : memref<400x1024xbf16, #tpu.memory_space<vmem>>, vector<400x256xbf16>
    %cst_13 = arith.constant dense<0.000000e+00> : vector<16x256xf32>
    %20 = tpu.matmul %0, %19, %cst_13 {dimension_numbers = #tpu.dot_dimension_numbers<[1], [0], [0], [1], [0, 0, 1, 1], [], []>} : vector<16x400xbf16>, vector<400x256xbf16>, vector<16x256xf32> -> vector<16x256xf32>
    %c0_14 = arith.constant 0 : index
    %c256_15 = arith.constant 256 : index
    %21 = vector.load %arg3[%c0_14, %c256_15] : memref<1x1024xf32, #tpu.memory_space<vmem>>, vector<1x256xf32>
    %22 = vector.broadcast %21 : vector<1x256xf32> to vector<16x256xf32>
    %23 = arith.addf %20, %22 : vector<16x256xf32>
    %cst_16 = arith.constant 5.000000e-01 : f32
    %24 = vector.broadcast %cst_16 : f32 to vector<16x256xf32>
    %25 = arith.mulf %24, %23 : vector<16x256xf32>
    %26 = math.tanh %25 : vector<16x256xf32>
    %cst_17 = arith.constant 1.000000e+00 : f32
    %27 = vector.broadcast %cst_17 : f32 to vector<16x256xf32>
    %28 = arith.addf %27, %26 : vector<16x256xf32>
    %cst_18 = arith.constant 5.000000e-01 : f32
    %29 = vector.broadcast %cst_18 : f32 to vector<16x256xf32>
    %30 = arith.mulf %29, %28 : vector<16x256xf32>
    %31 = arith.mulf %23, %30 : vector<16x256xf32>
    %32 = arith.truncf %31 : vector<16x256xf32> to vector<16x256xbf16>
    %c256_19 = arith.constant 256 : index
    %c0_20 = arith.constant 0 : index
    %33 = vector.load %arg4[%c256_19, %c0_20] : memref<1024x128xbf16, #tpu.memory_space<vmem>>, vector<256x128xbf16>
    %cst_21 = arith.constant dense<0.000000e+00> : vector<16x128xf32>
    %34 = tpu.matmul %32, %33, %cst_21 {dimension_numbers = #tpu.dot_dimension_numbers<[1], [0], [0], [1], [0, 0, 1, 1], [], []>} : vector<16x256xbf16>, vector<256x128xbf16>, vector<16x128xf32> -> vector<16x128xf32>
    %35 = arith.addf %18, %34 : vector<16x128xf32>
    %c0_22 = arith.constant 0 : index
    %c512 = arith.constant 512 : index
    %36 = vector.load %arg2[%c0_22, %c512] : memref<400x1024xbf16, #tpu.memory_space<vmem>>, vector<400x256xbf16>
    %cst_23 = arith.constant dense<0.000000e+00> : vector<16x256xf32>
    %37 = tpu.matmul %0, %36, %cst_23 {dimension_numbers = #tpu.dot_dimension_numbers<[1], [0], [0], [1], [0, 0, 1, 1], [], []>} : vector<16x400xbf16>, vector<400x256xbf16>, vector<16x256xf32> -> vector<16x256xf32>
    %c0_24 = arith.constant 0 : index
    %c512_25 = arith.constant 512 : index
    %38 = vector.load %arg3[%c0_24, %c512_25] : memref<1x1024xf32, #tpu.memory_space<vmem>>, vector<1x256xf32>
    %39 = vector.broadcast %38 : vector<1x256xf32> to vector<16x256xf32>
    %40 = arith.addf %37, %39 : vector<16x256xf32>
    %cst_26 = arith.constant 5.000000e-01 : f32
    %41 = vector.broadcast %cst_26 : f32 to vector<16x256xf32>
    %42 = arith.mulf %41, %40 : vector<16x256xf32>
    %43 = math.tanh %42 : vector<16x256xf32>
    %cst_27 = arith.constant 1.000000e+00 : f32
    %44 = vector.broadcast %cst_27 : f32 to vector<16x256xf32>
    %45 = arith.addf %44, %43 : vector<16x256xf32>
    %cst_28 = arith.constant 5.000000e-01 : f32
    %46 = vector.broadcast %cst_28 : f32 to vector<16x256xf32>
    %47 = arith.mulf %46, %45 : vector<16x256xf32>
    %48 = arith.mulf %40, %47 : vector<16x256xf32>
    %49 = arith.truncf %48 : vector<16x256xf32> to vector<16x256xbf16>
    %c512_29 = arith.constant 512 : index
    %c0_30 = arith.constant 0 : index
    %50 = vector.load %arg4[%c512_29, %c0_30] : memref<1024x128xbf16, #tpu.memory_space<vmem>>, vector<256x128xbf16>
    %cst_31 = arith.constant dense<0.000000e+00> : vector<16x128xf32>
    %51 = tpu.matmul %49, %50, %cst_31 {dimension_numbers = #tpu.dot_dimension_numbers<[1], [0], [0], [1], [0, 0, 1, 1], [], []>} : vector<16x256xbf16>, vector<256x128xbf16>, vector<16x128xf32> -> vector<16x128xf32>
    %52 = arith.addf %35, %51 : vector<16x128xf32>
    %c0_32 = arith.constant 0 : index
    %c768 = arith.constant 768 : index
    %53 = vector.load %arg2[%c0_32, %c768] : memref<400x1024xbf16, #tpu.memory_space<vmem>>, vector<400x256xbf16>
    %cst_33 = arith.constant dense<0.000000e+00> : vector<16x256xf32>
    %54 = tpu.matmul %0, %53, %cst_33 {dimension_numbers = #tpu.dot_dimension_numbers<[1], [0], [0], [1], [0, 0, 1, 1], [], []>} : vector<16x400xbf16>, vector<400x256xbf16>, vector<16x256xf32> -> vector<16x256xf32>
    %c0_34 = arith.constant 0 : index
    %c768_35 = arith.constant 768 : index
    %55 = vector.load %arg3[%c0_34, %c768_35] : memref<1x1024xf32, #tpu.memory_space<vmem>>, vector<1x256xf32>
    %56 = vector.broadcast %55 : vector<1x256xf32> to vector<16x256xf32>
    %57 = arith.addf %54, %56 : vector<16x256xf32>
    %cst_36 = arith.constant 5.000000e-01 : f32
    %58 = vector.broadcast %cst_36 : f32 to vector<16x256xf32>
    %59 = arith.mulf %58, %57 : vector<16x256xf32>
    %60 = math.tanh %59 : vector<16x256xf32>
    %cst_37 = arith.constant 1.000000e+00 : f32
    %61 = vector.broadcast %cst_37 : f32 to vector<16x256xf32>
    %62 = arith.addf %61, %60 : vector<16x256xf32>
    %cst_38 = arith.constant 5.000000e-01 : f32
    %63 = vector.broadcast %cst_38 : f32 to vector<16x256xf32>
    %64 = arith.mulf %63, %62 : vector<16x256xf32>
    %65 = arith.mulf %57, %64 : vector<16x256xf32>
    %66 = arith.truncf %65 : vector<16x256xf32> to vector<16x256xbf16>
    %c768_39 = arith.constant 768 : index
    %c0_40 = arith.constant 0 : index
    %67 = vector.load %arg4[%c768_39, %c0_40] : memref<1024x128xbf16, #tpu.memory_space<vmem>>, vector<256x128xbf16>
    %cst_41 = arith.constant dense<0.000000e+00> : vector<16x128xf32>
    %68 = tpu.matmul %66, %67, %cst_41 {dimension_numbers = #tpu.dot_dimension_numbers<[1], [0], [0], [1], [0, 0, 1, 1], [], []>} : vector<16x256xbf16>, vector<256x128xbf16>, vector<16x128xf32> -> vector<16x128xf32>
    %69 = arith.addf %52, %68 : vector<16x128xf32>
    %c0_42 = arith.constant 0 : index
    %c0_43 = arith.constant 0 : index
    %70 = vector.load %arg5[%c0_42, %c0_43] : memref<1x128xf32, #tpu.memory_space<vmem>>, vector<1x128xf32>
    %71 = vector.broadcast %70 : vector<1x128xf32> to vector<16x128xf32>
    %72 = arith.addf %69, %71 : vector<16x128xf32>
    %cst_44 = arith.constant 5.000000e-01 : f32
    %73 = vector.broadcast %cst_44 : f32 to vector<16x128xf32>
    %74 = arith.mulf %73, %72 : vector<16x128xf32>
    %75 = math.tanh %74 : vector<16x128xf32>
    %cst_45 = arith.constant 1.000000e+00 : f32
    %76 = vector.broadcast %cst_45 : f32 to vector<16x128xf32>
    %77 = arith.addf %76, %75 : vector<16x128xf32>
    %cst_46 = arith.constant 5.000000e-01 : f32
    %78 = vector.broadcast %cst_46 : f32 to vector<16x128xf32>
    %79 = arith.mulf %78, %77 : vector<16x128xf32>
    %80 = arith.mulf %72, %79 : vector<16x128xf32>
    %81 = arith.truncf %80 : vector<16x128xf32> to vector<16x128xbf16>
    %c0_47 = arith.constant 0 : index
    %c0_48 = arith.constant 0 : index
    %82 = vector.load %arg6[%c0_47, %c0_48] : memref<128x128xbf16, #tpu.memory_space<vmem>>, vector<128x128xbf16>
    %cst_49 = arith.constant dense<0.000000e+00> : vector<16x128xf32>
    %83 = tpu.matmul %81, %82, %cst_49 {dimension_numbers = #tpu.dot_dimension_numbers<[1], [0], [0], [1], [0, 0, 1, 1], [], []>} : vector<16x128xbf16>, vector<128x128xbf16>, vector<16x128xf32> -> vector<16x128xf32>
    %c0_50 = arith.constant 0 : index
    %c0_51 = arith.constant 0 : index
    %84 = vector.load %arg7[%c0_50, %c0_51] : memref<1x128xf32, #tpu.memory_space<vmem>>, vector<1x128xf32>
    %85 = vector.broadcast %84 : vector<1x128xf32> to vector<16x128xf32>
    %86 = arith.addf %83, %85 : vector<16x128xf32>
    %cst_52 = arith.constant 5.000000e-01 : f32
    %87 = vector.broadcast %cst_52 : f32 to vector<16x128xf32>
    %88 = arith.mulf %87, %86 : vector<16x128xf32>
    %89 = math.tanh %88 : vector<16x128xf32>
    %cst_53 = arith.constant 1.000000e+00 : f32
    %90 = vector.broadcast %cst_53 : f32 to vector<16x128xf32>
    %91 = arith.addf %90, %89 : vector<16x128xf32>
    %cst_54 = arith.constant 5.000000e-01 : f32
    %92 = vector.broadcast %cst_54 : f32 to vector<16x128xf32>
    %93 = arith.mulf %92, %91 : vector<16x128xf32>
    %94 = arith.mulf %86, %93 : vector<16x128xf32>
    %95 = arith.truncf %94 : vector<16x128xf32> to vector<16x128xbf16>
    %c0_55 = arith.constant 0 : index
    %c0_56 = arith.constant 0 : index
    %96 = vector.load %arg8[%c0_55, %c0_56] : memref<128x64xbf16, #tpu.memory_space<vmem>>, vector<128x64xbf16>
    %cst_57 = arith.constant dense<0.000000e+00> : vector<16x64xf32>
    %97 = tpu.matmul %95, %96, %cst_57 {dimension_numbers = #tpu.dot_dimension_numbers<[1], [0], [0], [1], [0, 0, 1, 1], [], []>} : vector<16x128xbf16>, vector<128x64xbf16>, vector<16x64xf32> -> vector<16x64xf32>
    %c0_58 = arith.constant 0 : index
    %c0_59 = arith.constant 0 : index
    %98 = vector.load %arg9[%c0_58, %c0_59] : memref<1x64xf32, #tpu.memory_space<vmem>>, vector<1x64xf32>
    %99 = vector.broadcast %98 : vector<1x64xf32> to vector<16x64xf32>
    %100 = arith.addf %97, %99 : vector<16x64xf32>
    %c0_60 = arith.constant 0 : index
    %c0_61 = arith.constant 0 : index
    %101 = vector.load %arg10[%c0_60, %c0_61] : memref<16x64xf32, #tpu.memory_space<vmem>>, vector<16x64xf32>
    tpu.vector_store %arg10[%c0_60, %c0_61], %100 {strides = array<i32>} : memref<16x64xf32, #tpu.memory_space<vmem>>, vector<16x64xf32>,
    return
  }
  func.func @transform_0(%arg0: i32) -> (i32, i32) {
    %c0_i32 = arith.constant 0 : i32
    %c0_i32_0 = arith.constant 0 : i32
    return %arg0, %c0_i32 : i32, i32
  }
  func.func @transform_1(%arg0: i32) -> (i32, i32) {
    %c0_i32 = arith.constant 0 : i32
    %c0_i32_0 = arith.constant 0 : i32
    %c0_i32_1 = arith.constant 0 : i32
    return %c0_i32, %c0_i32_0 : i32, i32
  }
  func.func @transform_2(%arg0: i32) -> (i32, i32) {
    %c0_i32 = arith.constant 0 : i32
    %c0_i32_0 = arith.constant 0 : i32
    %c0_i32_1 = arith.constant 0 : i32
    return %c0_i32, %c0_i32_0 : i32, i32
  }
  func.func @transform_3(%arg0: i32) -> (i32, i32) {
    %c0_i32 = arith.constant 0 : i32
    %c0_i32_0 = arith.constant 0 : i32
    %c0_i32_1 = arith.constant 0 : i32
    return %c0_i32, %c0_i32_0 : i32, i32
  }
  func.func @transform_4(%arg0: i32) -> (i32, i32) {
    %c0_i32 = arith.constant 0 : i32
    %c0_i32_0 = arith.constant 0 : i32
    %c0_i32_1 = arith.constant 0 : i32
    return %c0_i32, %c0_i32_0 : i32, i32
  }
  func.func @transform_5(%arg0: i32) -> (i32, i32) {
    %c0_i32 = arith.constant 0 : i32
    %c0_i32_0 = arith.constant 0 : i32
    %c0_i32_1 = arith.constant 0 : i32
    return %c0_i32, %c0_i32_0 : i32, i32
  }
  func.func @transform_6(%arg0: i32) -> (i32, i32) {
    %c0_i32 = arith.constant 0 : i32
    %c0_i32_0 = arith.constant 0 : i32
    %c0_i32_1 = arith.constant 0 : i32
    return %c0_i32, %c0_i32_0 : i32, i32
  }
  func.func @transform_7(%arg0: i32) -> (i32, i32) {
    %c0_i32 = arith.constant 0 : i32
    %c0_i32_0 = arith.constant 0 : i32
    %c0_i32_1 = arith.constant 0 : i32
    return %c0_i32, %c0_i32_0 : i32, i32
  }
  func.func @transform_8(%arg0: i32) -> (i32, i32) {
    %c0_i32 = arith.constant 0 : i32
    %c0_i32_0 = arith.constant 0 : i32
    %c0_i32_1 = arith.constant 0 : i32
    return %c0_i32, %c0_i32_0 : i32, i32
  }
  func.func @transform_9(%arg0: i32) -> (i32, i32) {
    %c0_i32 = arith.constant 0 : i32
    %c0_i32_0 = arith.constant 0 : i32
    return %arg0, %c0_i32 : i32, i32
  }
}

</mosaic_0001>

<bundles_post_ra>
// kernel: tpu_custom_call.1
= control target key start
LH: loop header
LB: loop body
LE: loop exit
PB: predicated region body
PF: predicated region fallthrough
CT: control target
= control target key end

     0   :  { %14 = vsyncpa [#allocation3], 0  ;;  %s3647_s0 = inlined_call_operand.vmem [shape: bf16[16,400], index: 0, kind: input, shape index: {}]   ;;  %s3648_s1 = inlined_call_operand.hbm [shape: bf16[400,1024], index: 1, kind: input, shape index: {}]   ;;  %s3649_s2 = inlined_call_operand.vmem [shape: f32[1,1024], index: 2, kind: input, shape index: {}]   ;;  %s3650_s3 = inlined_call_operand.hbm [shape: bf16[1024,128], index: 3, kind: input, shape index: {}]   ;;  %s3651_s4 = inlined_call_operand.vmem [shape: f32[1,128], index: 4, kind: input, shape index: {}]   ;;  %s3652_s5 = inlined_call_operand.vmem [shape: bf16[128,128], index: 5, kind: input, shape index: {}]   ;;  %s3653_s6 = inlined_call_operand.vmem [shape: f32[1,128], index: 6, kind: input, shape index: {}]   ;;  %s3654_s7 = inlined_call_operand.vmem [shape: bf16[128,64], index: 7, kind: input, shape index: {}]   ;;  %s3655_s8 = inlined_call_operand.vmem [shape: f32[1,64], index: 8, kind: input, shape index: {}]   ;;  %s3656_s9 = inlined_call_operand.hbm [shape: f32[16,64], index: 9, kind: output, shape index: {}]  }
   0x1   :  { %15 = vsyncpa [#allocation6], 0 }
   0x2   :  { %16 = vsyncpa [#allocation4], 0  ;;  %s3369_s30 = smov [#allocation2]  }
   0x3   :  { %s24_s10 = sshll.u32 %s3369_s30, 4  ;;  %s25_s10 = int_to_ptr.vmem [resolvable:$true] %s24_s10 }
   0x4   :  { %s3311_s11 = scalar_lea.vmem %s25_s10, 25600  ;;  %p3316_p1 = scmp.lt.s32.totalorder %s25_s10, %s25_s10 }
   0x5   :  { %p3312_p0 = scmp.ne.s32.totalorder %s25_s10, %s3311_s11  ;;  %p3317_p2 = scmp.lt.s32.totalorder %s3311_s11, %s3311_s11 }
   0x7   :  { %p3318_p3 = por %p3317_p2, %p3316_p1 }
   0x9   :  { %p3319_p4 = pnand %p3318_p3, %p3312_p0 }
   0xb   :  { %3322 = shalt.err (!%p3319_p4)
}
   0xc   :  { %s3370_s12 = smov 512   ;;  %s3371_s13 = smov 32  }
   0xd   :  { %30 = dma.hbm_to_vmem [thread:$0]  %s3648_s1, 25600, %s25_s10, [#allocation3], %s3370_s12, %s3370_s12, %s3371_s13  }
   0xe   :  { %s3372_s16 = smov [#allocation5]  }
   0xf   :  { %s38_s17 = sshll.u32 %s3372_s16, 4  ;;  %s39_s17 = int_to_ptr.vmem [resolvable:$true] %s38_s17 }
  0x10   :  { %s3331_s18 = scalar_lea.vmem %s39_s17, 8192  ;;  %p3336_p6 = scmp.lt.s32.totalorder %s39_s17, %s39_s17 }
  0x11   :  { %p3332_p5 = scmp.ne.s32.totalorder %s39_s17, %s3331_s18  ;;  %p3337_p7 = scmp.lt.s32.totalorder %s3331_s18, %s3331_s18 }
  0x13   :  { %p3338_p8 = por %p3337_p7, %p3336_p6 }
  0x15   :  { %p3339_p9 = pnand %p3338_p8, %p3332_p5 }
  0x17   :  { %3342 = shalt.err (!%p3339_p9)
}
  0x18   :  { %s3373_s19 = smov 64   ;;  %s3374_s20 = smov 4  }
  0x19   :  { %44 = dma.hbm_to_vmem [thread:$0]  %s3650_s3, 8192, %s39_s17, [#allocation6], %s3373_s19, %s3373_s19, %s3374_s20  }
  0x1a   :  { %3363 = dma.done.wait [#allocation3], 25600  }
  0x1b   :  { %3364 = vsyncadd [#allocation3], 4294941696 }
  0x1c   :  { %3365 = dma.done.wait [#allocation6], 8192  }
  0x1d   :  { %3366 = vsyncadd [#allocation6], 4294959104  ;;  %v80_v0 = vld [vmem:[#allocation2 + $0x1c0] sm:$0xff]  ;;  %vm397_vm0 = vcmask 130048   ;;  %v3439_v35 = vld [vmem:[%s3647_s0 + $0xc] ss:$16 sps:$4 sm:$0xff]  }
  0x1e   :  { %v81_v1 = vld [vmem:[#allocation2 + $0x1e0] sm:$0xff]  ;;  %2779 = vmatprep.mubr.msk.bf16.mxu1 %vm397_vm0, %v3439_v35  ;;  %vm3376_vm1 = vmmov 0   ;;  %vm2704_vm2 = vcmask 523264   ;;  %s3377_s29 = smov [#allocation7]  }
  0x1f   :  { %v112_v2 = vld [vmem:[#allocation2 + $0x5c0] sm:$0xff]  ;;  %v2744_v3 = vcombine.high %v80_v0, %v81_v1  ;;  %v2743_v5 = vcombine.low %v80_v0, %v81_v1  ;;  %s2712_s30 = sshll.u32 %s3377_s29, 4  ;;  %s2713_s30 = int_to_ptr.vmem [resolvable:$true] %s2712_s30 }
  0x20   :  { %v113_v4 = vld [vmem:[#allocation2 + $0x5e0] sm:$0xff]  ;;  %s3343_s10 = scalar_lea.vmem %s2713_s30, 256  ;;  %p3348_p11 = scmp.lt.s32.totalorder %s2713_s30, %s2713_s30 }
  0x21   :  { %v78_v6 = vld [vmem:[#allocation2 + $0x180] sm:$0xff]  ;;  %v2776_v8 = vcombine.high %v112_v2, %v113_v4  ;;  %v2775_v9 = vcombine.low %v112_v2, %v113_v4  ;;  %401 = vmatprep.subr.bf16.mxu0 %v2744_v3  ;;  %p3344_p10 = scmp.ne.s32.totalorder %s2713_s30, %s3343_s10  ;;  %p3349_p12 = scmp.lt.s32.totalorder %s3343_s10, %s3343_s10 }
  0x22   :  { %v79_v7 = vld [vmem:[#allocation2 + $0x1a0] sm:$0xff]  ;;  %402 = vmatpush1.bf16.msra.mxu0 %v2743_v5 }
  0x23   :  { %v2742_v10 = vcombine.high %v78_v6, %v79_v7  ;;  %v110_v11 = vld [vmem:[#allocation2 + $0x580] sm:$0xff]  ;;  %444 = vmatprep.subr.bf16.mxu1 %v2776_v8  ;;  %v2741_v18 = vcombine.low %v78_v6, %v79_v7  ;;  %p3350_p13 = por %p3349_p12, %p3348_p11 }
  0x24   :  { %v111_v12 = vld [vmem:[#allocation2 + $0x5a0] sm:$0xff]  ;;  %445 = vmatpush1.bf16.msra.mxu1 %v2775_v9 }
  0x25   :  { %v76_v13 = vld [vmem:[#allocation2 + $0x140] sm:$0xff]  ;;  %v2774_v14 = vcombine.high %v110_v11, %v111_v12  ;;  %403 = vmatprep.subr.bf16.mxu0 %v2742_v10  ;;  %v2773_v19 = vcombine.low %v110_v11, %v111_v12  ;;  %v555_v10 = vld [vmem:[#allocation2 + $0x1c8] sm:$0xff]  ;;  %p3351_p0 = pnand %p3350_p13, %p3344_p10 }
  0x26   :  { %v77_v15 = vld [vmem:[#allocation2 + $0x160] sm:$0xff]  ;;  %404 = vmatpush1.bf16.msra.mxu0 %v2741_v18  ;;  %v556_v11 = vld [vmem:[#allocation2 + $0x1e8] sm:$0xff] }
  0x27   :  { %v108_v16 = vld [vmem:[#allocation2 + $0x540] sm:$0xff]  ;;  %v2740_v20 = vcombine.high %v76_v13, %v77_v15  ;;  %446 = vmatprep.subr.bf16.mxu1 %v2774_v14  ;;  %v2739_v26 = vcombine.low %v76_v13, %v77_v15  ;;  %v2795_v15 = vcombine.high %v555_v10, %v556_v11  ;;  %v3452_v18 = vld [vmem:[%s3647_s0 + $0x8] ss:$16 sps:$4 sm:$0xff]  }
  0x28   :  { %v109_v17 = vld [vmem:[#allocation2 + $0x560] sm:$0xff]  ;;  %447 = vmatpush1.bf16.msra.mxu1 %v2773_v19  ;;  %v553_v19 = vld [vmem:[#allocation2 + $0x188] sm:$0xff] }
  0x29   :  { %v2772_v21 = vcombine.high %v108_v16, %v109_v17  ;;  %v74_v22 = vld [vmem:[#allocation2 + $0x100] sm:$0xff]  ;;  %405 = vmatprep.subr.bf16.mxu0 %v2740_v20  ;;  %v2771_v27 = vcombine.low %v108_v16, %v109_v17  ;;  %v554_v20 = vld [vmem:[#allocation2 + $0x1a8] sm:$0xff] }
  0x2a   :  { %v75_v23 = vld [vmem:[#allocation2 + $0x120] sm:$0xff]  ;;  %406 = vmatpush1.bf16.msra.mxu0 %v2739_v26  ;;  %v551_v26 = vld [vmem:[#allocation2 + $0x148] sm:$0xff] }
  0x2b   :  { %v106_v24 = vld [vmem:[#allocation2 + $0x500] sm:$0xff]  ;;  %v2738_v28 = vcombine.high %v74_v22, %v75_v23  ;;  %448 = vmatprep.subr.bf16.mxu1 %v2772_v21  ;;  %v2737_v34 = vcombine.low %v74_v22, %v75_v23 }
  0x2c   :  { %v107_v25 = vld [vmem:[#allocation2 + $0x520] sm:$0xff]  ;;  %449 = vmatpush1.bf16.msra.mxu1 %v2771_v27  ;;  %v552_v27 = vld [vmem:[#allocation2 + $0x168] sm:$0xff] }
  0x2d   :  { %v2770_v29 = vcombine.high %v106_v24, %v107_v25  ;;  %v72_v30 = vld [vmem:[#allocation2 + $0xc0] sm:$0xff]  ;;  %407 = vmatprep.subr.bf16.mxu0 %v2738_v28  ;;  %v2769_v36 = vcombine.low %v106_v24, %v107_v25  ;;  %v2794_v24 = vcombine.low %v555_v10, %v556_v11  ;;  %v2793_v28 = vcombine.high %v553_v19, %v554_v20 }
  0x2e   :  { %v73_v31 = vld [vmem:[#allocation2 + $0xe0] sm:$0xff]  ;;  %408 = vmatpush1.bf16.msra.mxu0 %v2737_v34  ;;  %v549_v34 = vld [vmem:[#allocation2 + $0x108] sm:$0xff] }
  0x2f   :  { %v104_v32 = vld [vmem:[#allocation2 + $0x4c0] sm:$0xff]  ;;  %v2736_v37 = vcombine.high %v72_v30, %v73_v31  ;;  %450 = vmatprep.subr.bf16.mxu1 %v2770_v29  ;;  %v2735_v43 = vcombine.low %v72_v30, %v73_v31 }
  0x30   :  { %v105_v33 = vld [vmem:[#allocation2 + $0x4e0] sm:$0xff]  ;;  %451 = vmatpush1.bf16.msra.mxu1 %v2769_v36  ;;  %v550_v36 = vld [vmem:[#allocation2 + $0x128] sm:$0xff] }
  0x31   :  { %v2768_v38 = vcombine.high %v104_v32, %v105_v33  ;;  %v70_v39 = vld [vmem:[#allocation2 + $0x80] sm:$0xff]  ;;  %409 = vmatprep.subr.bf16.mxu0 %v2736_v37  ;;  %v2767_v44 = vcombine.low %v104_v32, %v105_v33  ;;  %v2792_v32 = vcombine.low %v553_v19, %v554_v20  ;;  %v2791_v37 = vcombine.high %v551_v26, %v552_v27 }
  0x32   :  { %v71_v40 = vld [vmem:[#allocation2 + $0xa0] sm:$0xff]  ;;  %410 = vmatpush1.bf16.msra.mxu0 %v2735_v43  ;;  %v547_v43 = vld [vmem:[#allocation2 + $0xc8] sm:$0xff] }
  0x33   :  { %v102_v41 = vld [vmem:[#allocation2 + $0x480] sm:$0xff]  ;;  %v2734_v45 = vcombine.high %v70_v39, %v71_v40  ;;  %452 = vmatprep.subr.bf16.mxu1 %v2768_v38  ;;  %v2733_v51 = vcombine.low %v70_v39, %v71_v40 }
  0x34   :  { %v103_v42 = vld [vmem:[#allocation2 + $0x4a0] sm:$0xff]  ;;  %453 = vmatpush1.bf16.msra.mxu1 %v2767_v44  ;;  %v548_v44 = vld [vmem:[#allocation2 + $0xe8] sm:$0xff] }
  0x35   :  { %v2766_v46 = vcombine.high %v102_v41, %v103_v42  ;;  %v68_v47 = vld [vmem:[#allocation2 + $0x40] sm:$0xff]  ;;  %411 = vmatprep.subr.bf16.mxu0 %v2734_v45  ;;  %v2765_v52 = vcombine.low %v102_v41, %v103_v42  ;;  %v2790_v41 = vcombine.low %v551_v26, %v552_v27  ;;  %v2789_v45 = vcombine.high %v549_v34, %v550_v36  ;;  %v582_v26 = vld [vmem:[#allocation2 + $0x528] sm:$0xff] }
  0x36   :  { %v69_v48 = vld [vmem:[#allocation2 + $0x60] sm:$0xff]  ;;  %412 = vmatpush1.bf16.msra.mxu0 %v2733_v51  ;;  %v545_v51 = vld [vmem:[#allocation2 + $0x88] sm:$0xff] }
  0x37   :  { %v100_v49 = vld [vmem:[#allocation2 + $0x440] sm:$0xff]  ;;  %v2732_v53 = vcombine.high %v68_v47, %v69_v48  ;;  %454 = vmatprep.subr.bf16.mxu1 %v2766_v46  ;;  %v2731_v60 = vcombine.low %v68_v47, %v69_v48 }
  0x38   :  { %v101_v50 = vld [vmem:[#allocation2 + $0x460] sm:$0xff]  ;;  %455 = vmatpush1.bf16.msra.mxu1 %v2765_v52  ;;  %v546_v52 = vld [vmem:[#allocation2 + $0xa8] sm:$0xff] }
  0x39   :  { %v66_v54 = vld [vmem:[#allocation2] sm:$0xff]  ;;  %v2764_v55 = vcombine.high %v100_v49, %v101_v50  ;;  %413 = vmatprep.subr.bf16.mxu0 %v2732_v53  ;;  %v2763_v61 = vcombine.low %v100_v49, %v101_v50  ;;  %v2788_v49 = vcombine.low %v549_v34, %v550_v36  ;;  %v2787_v53 = vcombine.high %v547_v43, %v548_v44  ;;  %v580_v34 = vld [vmem:[#allocation2 + $0x4e8] sm:$0xff] }
  0x3a   :  { %v67_v56 = vld [vmem:[#allocation2 + $0x20] sm:$0xff]  ;;  %414 = vmatpush1.bf16.msra.mxu0 %v2731_v60  ;;  %v544_v60 = vld [vmem:[#allocation2 + $0x68] sm:$0xff] }
  0x3b   :  { %v98_v57 = vld [vmem:[#allocation2 + $0x400] sm:$0xff]  ;;  %v2730_v62 = vcombine.high %v66_v54, %v67_v56  ;;  %456 = vmatprep.subr.bf16.mxu1 %v2764_v55  ;;  %v2729_v4 = vcombine.low %v66_v54, %v67_v56 }
  0x3c   :  { %v99_v58 = vld [vmem:[#allocation2 + $0x420] sm:$0xff]  ;;  %457 = vmatpush1.bf16.msra.mxu1 %v2763_v61  ;;  %v2785_v61 = vcombine.high %v545_v51, %v546_v52 }
  0x3d   :  { %v3446_v59 = vld [vmem:[%s3647_s0 + $0x4] ss:$16 sps:$4 sm:$0xff]   ;;  %v2762_v63 = vcombine.high %v98_v57, %v99_v58  ;;  %415 = vmatprep.subr.bf16.mxu0 %v2730_v62  ;;  %v2761_v5 = vcombine.low %v98_v57, %v99_v58  ;;  %v2786_v57 = vcombine.low %v547_v43, %v548_v44  ;;  %v3459_v10 = vld [vmem:[%s3647_s0] ss:$16 sps:$4 sm:$0xff]  }
  0x3e   :  { %v96_v0 = vld [vmem:[#allocation2 + $0x3c0] sm:$0xff]  ;;  %433 = vmatprep.mubr.bf16.mxu0 %v3446_v59  ;;  %416 = vmatpush1.bf16.msra.mxu0 %v2729_v4  ;;  %v542_v4 = vld [vmem:[#allocation2 + $0x28] sm:$0xff] }
  0x3f   :  { %v97_v1 = vld [vmem:[#allocation2 + $0x3e0] sm:$0xff]  ;;  %458 = vmatprep.subr.bf16.mxu1 %v2762_v63  ;;  %v587_v63 = vld [vmem:[#allocation2 + $0x5c8] sm:$0xff] }
  0x40   :  { %v114_v2 = vld [vmem:[#allocation2 + $0x600] sm:$0xff]  ;;  %v2760_v6 = vcombine.high %v96_v0, %v97_v1  ;;  %v2759_v12 = vcombine.low %v96_v0, %v97_v1  ;;  %459 = vmatpush1.bf16.msra.mxu1 %v2761_v5  ;;  %v588_v0 = vld [vmem:[#allocation2 + $0x5e8] sm:$0xff]  ;;  %v2784_v1 = vcombine.low %v545_v51, %v546_v52 }
  0x41   :  { %v115_v3 = vld [vmem:[#allocation2 + $0x620] sm:$0xff]  ;;  %v2827_v11 = vcombine.high %v587_v63, %v588_v0 }
  0x42   :  { %v2778_v7 = vcombine.high %v114_v2, %v115_v3  ;;  %v94_v8 = vld [vmem:[#allocation2 + $0x380] sm:$0xff]  ;;  %417 = vmatprep.subr.bf16.mxu0 %v2760_v6  ;;  %v2777_v13 = vcombine.low %v114_v2, %v115_v3  ;;  %v541_v3 = vld [vmem:[#allocation2 + $0x8] sm:$0xff] }
  0x43   :  { %v95_v9 = vld [vmem:[#allocation2 + $0x3a0] sm:$0xff]  ;;  %418 = vmatpush2.bf16.msra.mxu0 %v2759_v12  ;;  %v571_v12 = vld [vmem:[#allocation2 + $0x3c8] sm:$0xff]  ;;  %v2780_v19 = vcombine.low %v541_v3, %v542_v4 }
  0x44   :  { %v2758_v14 = vcombine.high %v94_v8, %v95_v9  ;;  %474 = vmatprep.subr.bf16.mxu1 %v2778_v7  ;;  %v92_v16 = vld [vmem:[#allocation2 + $0x340] sm:$0xff]  ;;  %v2757_v21 = vcombine.low %v94_v8, %v95_v9  ;;  %v585_v7 = vld [vmem:[#allocation2 + $0x588] sm:$0xff] }
  0x45   :  { %v93_v17 = vld [vmem:[#allocation2 + $0x360] sm:$0xff]  ;;  %475 = vmatpush2.bf16.msra.mxu1 %v2777_v13  ;;  %v586_v8 = vld [vmem:[#allocation2 + $0x5a8] sm:$0xff] }
  0x46   :  { %v90_v22 = vld [vmem:[#allocation2 + $0x300] sm:$0xff]  ;;  %419 = vmatprep.subr.bf16.mxu0 %v2758_v14  ;;  %v2756_v25 = vcombine.high %v92_v16, %v93_v17  ;;  %853 = vmatprep.subr.bf16.mxu1 %v2795_v15  ;;  %v2755_v29 = vcombine.low %v92_v16, %v93_v17  ;;  %v572_v13 = vld [vmem:[#allocation2 + $0x3e8] sm:$0xff]  ;;  %v2781_v14 = vcombine.high %v541_v3, %v542_v4 }
  0x47   :  { %v91_v23 = vld [vmem:[#allocation2 + $0x320] sm:$0xff]  ;;  %420 = vmatpush2.bf16.msra.mxu0 %v2757_v21  ;;  %v2826_v15 = vcombine.low %v587_v63, %v588_v0  ;;  %v583_v16 = vld [vmem:[#allocation2 + $0x548] sm:$0xff]  ;;  %v2825_v20 = vcombine.high %v585_v7, %v586_v8  ;;  %v2810_v27 = vcombine.low %v571_v12, %v572_v13 }
  0x48   :  { %477 = vmatmul.mubr.bf16.vlgmr.msra.gmra.mxu1 %v3452_v18  ;;  %v88_v30 = vld [vmem:[#allocation2 + $0x2c0] sm:$0xff]  ;;  %421 = vmatprep.subr.bf16.mxu0 %v2756_v25  ;;  %v2754_v33 = vcombine.high %v90_v22, %v91_v23  ;;  %v2753_v38 = vcombine.low %v90_v22, %v91_v23  ;;  %v584_v17 = vld [vmem:[#allocation2 + $0x568] sm:$0xff]  ;;  %v2811_v23 = vcombine.high %v571_v12, %v572_v13 }
  0x49   :  { %v89_v31 = vld [vmem:[#allocation2 + $0x2e0] sm:$0xff]  ;;  %854 = vmatpush1.bf16.msra.mxu1 %v2794_v24  ;;  %885 = vmatprep.mubr.bf16.mxu1 %v3446_v59  ;;  %v543_v59 = vld [vmem:[#allocation2 + $0x48] sm:$0xff]  ;;  %v2824_v24 = vcombine.low %v585_v7, %v586_v8 }
  0x4a   :  { %855 = vmatprep.subr.bf16.mxu1 %v2793_v28  ;;  %v86_v39 = vld [vmem:[#allocation2 + $0x280] sm:$0xff]  ;;  %v2752_v42 = vcombine.high %v88_v30, %v89_v31  ;;  %v2751_v46 = vcombine.low %v88_v30, %v89_v31  ;;  %v2783_v5 = vcombine.high %v543_v59, %v544_v60  ;;  %v2782_v9 = vcombine.low %v543_v59, %v544_v60  ;;  %v569_v21 = vld [vmem:[#allocation2 + $0x388] sm:$0xff] }
  0x4b   :  { %422 = vmatpush2.bf16.msra.mxu0 %v2755_v29  ;;  %v87_v40 = vld [vmem:[#allocation2 + $0x2a0] sm:$0xff]  ;;  %v570_v22 = vld [vmem:[#allocation2 + $0x3a8] sm:$0xff]  ;;  %v2823_v28 = vcombine.high %v583_v16, %v584_v17 }
  0x4c   :  { %423 = vmatprep.subr.bf16.mxu0 %v2754_v33  ;;  %v84_v47 = vld [vmem:[#allocation2 + $0x240] sm:$0xff]  ;;  %v2750_v50 = vcombine.high %v86_v39, %v87_v40  ;;  %v2749_v54 = vcombine.low %v86_v39, %v87_v40  ;;  %v581_v25 = vld [vmem:[#allocation2 + $0x508] sm:$0xff]  ;;  %v2809_v31 = vcombine.high %v569_v21, %v570_v22  ;;  %v2808_v36 = vcombine.low %v569_v21, %v570_v22 }
  0x4d   :  { %856 = vmatpush1.bf16.msra.mxu1 %v2792_v32  ;;  %v85_v48 = vld [vmem:[#allocation2 + $0x260] sm:$0xff]  ;;  %v567_v29 = vld [vmem:[#allocation2 + $0x348] sm:$0xff]  ;;  %v2822_v32 = vcombine.low %v583_v16, %v584_v17  ;;  %v2820_v40 = vcombine.low %v581_v25, %v582_v26  ;;  %v3180_v16 = vld [vmem:[#allocation5 + $0x38] sm:$0xff]  }
  0x4e   :  { %857 = vmatprep.subr.bf16.mxu1 %v2791_v37  ;;  %v82_v55 = vld [vmem:[#allocation2 + $0x200] sm:$0xff]  ;;  %v2748_v58 = vcombine.high %v84_v47, %v85_v48  ;;  %v2747_v62 = vcombine.low %v84_v47, %v85_v48  ;;  %v568_v30 = vld [vmem:[#allocation2 + $0x368] sm:$0xff]  ;;  %v2821_v37 = vcombine.high %v581_v25, %v582_v26  ;;  %v3181_v17 = vld [vmem:[#allocation5 + $0x70] sm:$0xff]  }
  0x4f   :  { %424 = vmatpush2.bf16.msra.mxu0 %v2753_v38  ;;  %v83_v56 = vld [vmem:[#allocation2 + $0x220] sm:$0xff]  ;;  %v579_v33 = vld [vmem:[#allocation2 + $0x4c8] sm:$0xff]  ;;  %v2806_v43 = vcombine.low %v567_v29, %v568_v30  ;;  %v3189_v25 = vld [vmem:[#allocation5 + $0x50] sm:$0xff]  }
  0x50   :  { %425 = vmatprep.subr.bf16.mxu0 %v2752_v42  ;;  %v2746_v2 = vcombine.high %v82_v55, %v83_v56  ;;  %v2745_v6 = vcombine.low %v82_v55, %v83_v56  ;;  %v565_v38 = vld [vmem:[#allocation2 + $0x308] sm:$0xff]  ;;  %v2819_v44 = vcombine.high %v579_v33, %v580_v34  ;;  %v2818_v48 = vcombine.low %v579_v33, %v580_v34  ;;  %v3185_v22 = vld [vmem:[#allocation5 + $0x60] sm:$0xff]   ;;  %v3190_v26 = vld [vmem:[#allocation5 + $0x10] sm:$0xff]  }
  0x51   :  { %858 = vmatpush1.bf16.msra.mxu1 %v2790_v41  ;;  %v566_v39 = vld [vmem:[#allocation2 + $0x328] sm:$0xff]  ;;  %v3197_v33 = vld [vmem:[#allocation5 + $0xf0] sm:$0xff]  }
  0x52   :  { %859 = vmatprep.subr.bf16.mxu1 %v2789_v45  ;;  %v577_v41 = vld [vmem:[#allocation2 + $0x488] sm:$0xff]  ;;  %v2805_v47 = vcombine.high %v565_v38, %v566_v39  ;;  %v2804_v51 = vcombine.low %v565_v38, %v566_v39  ;;  %v3198_v34 = vld [vmem:[#allocation5 + $0xb0] sm:$0xff]   ;;  %v3201_v38 = vld [vmem:[#allocation5 + $0xe0] sm:$0xff]  }
  0x53   :  { %426 = vmatpush2.bf16.msra.mxu0 %v2751_v46  ;;  %v578_v42 = vld [vmem:[#allocation2 + $0x4a8] sm:$0xff]  ;;  %v3202_v39 = vld [vmem:[#allocation5 + $0xa0] sm:$0xff]  }
  0x54   :  { %427 = vmatprep.subr.bf16.mxu0 %v2750_v50  ;;  %v563_v45 = vld [vmem:[#allocation2 + $0x2c8] sm:$0xff]  ;;  %v2817_v52 = vcombine.high %v577_v41, %v578_v42  ;;  %v2816_v56 = vcombine.low %v577_v41, %v578_v42  ;;  %v3205_v41 = vld [vmem:[#allocation5 + $0xd0] sm:$0xff]  }
  0x55   :  { %860 = vmatpush1.bf16.msra.mxu1 %v2788_v49  ;;  %v564_v46 = vld [vmem:[#allocation2 + $0x2e8] sm:$0xff]  ;;  %v3206_v42 = vld [vmem:[#allocation5 + $0x90] sm:$0xff]  }
  0x56   :  { %861 = vmatprep.subr.bf16.mxu1 %v2787_v53  ;;  %v575_v49 = vld [vmem:[#allocation2 + $0x448] sm:$0xff]  ;;  %v2803_v55 = vcombine.high %v563_v45, %v564_v46  ;;  %v2802_v59 = vcombine.low %v563_v45, %v564_v46  ;;  %v3209_v45 = vld [vmem:[#allocation5 + $0xc0] sm:$0xff]  }
  0x57   :  { %428 = vmatpush2.bf16.msra.mxu0 %v2749_v54  ;;  %v576_v50 = vld [vmem:[#allocation2 + $0x468] sm:$0xff]  ;;  %v3210_v46 = vld [vmem:[#allocation5 + $0x80] sm:$0xff]  }
  0x58   :  { %429 = vmatprep.subr.bf16.mxu0 %v2748_v58  ;;  %v561_v53 = vld [vmem:[#allocation2 + $0x288] sm:$0xff]  ;;  %v2815_v60 = vcombine.high %v575_v49, %v576_v50  ;;  %v2814_v0 = vcombine.low %v575_v49, %v576_v50 }
  0x59   :  { %862 = vmatpush1.bf16.msra.mxu1 %v2786_v57  ;;  %v562_v54 = vld [vmem:[#allocation2 + $0x2a8] sm:$0xff] }
  0x5a   :  { %863 = vmatprep.subr.bf16.mxu1 %v2785_v61  ;;  %v573_v57 = vld [vmem:[#allocation2 + $0x408] sm:$0xff]  ;;  %v2801_v63 = vcombine.high %v561_v53, %v562_v54 }
  0x5b   :  { %430 = vmatpush2.bf16.msra.mxu0 %v2747_v62  ;;  %v574_v58 = vld [vmem:[#allocation2 + $0x428] sm:$0xff] }
  0x5c   :  { %431 = vmatprep.subr.bf16.mxu0 %v2746_v2  ;;  %v559_v61 = vld [vmem:[#allocation2 + $0x248] sm:$0xff]  ;;  %v2813_v2 = vcombine.high %v573_v57, %v574_v58  ;;  %v2812_v8 = vcombine.low %v573_v57, %v574_v58  ;;  %v116_v58 = vld [vmem:[%s3649_s2] sm:$0x3] }
  0x5d   :  { %864 = vmatpush1.bf16.msra.mxu1 %v2784_v1  ;;  %v560_v62 = vld [vmem:[#allocation2 + $0x268] sm:$0xff]  ;;  %v2800_v1 = vcombine.low %v561_v53, %v562_v54 }
  0x5e   :  { %865 = vmatprep.subr.bf16.mxu1 %v2783_v5  ;;  %v2799_v3 = vcombine.high %v559_v61, %v560_v62  ;;  %v589_v4 = vld [vmem:[#allocation2 + $0x608] sm:$0xff] }
  0x5f   :  { %432 = vmatpush2.bf16.msra.mxu0 %v2745_v6  ;;  %v590_v5 = vld [vmem:[#allocation2 + $0x628] sm:$0xff] }
  0x60   :  { %896 = vmatprep.subr.bf16.mxu0 %v2827_v11  ;;  %v557_v6 = vld [vmem:[#allocation2 + $0x208] sm:$0xff]  ;;  %v2829_v11 = vcombine.high %v589_v4, %v590_v5  ;;  %v2828_v13 = vcombine.low %v589_v4, %v590_v5 }
  0x61   :  { %866 = vmatpush1.bf16.msra.mxu1 %v2782_v9  ;;  %v558_v7 = vld [vmem:[#allocation2 + $0x228] sm:$0xff]  ;;  %v2798_v9 = vcombine.low %v559_v61, %v560_v62 }
  0x62   :  { %867 = vmatprep.subr.bf16.mxu1 %v2781_v14  ;;  %434 = vmatmul.mubr.bf16.vlgmr.msra.gmra.mxu0 %v3459_v10  ;;  %v2797_v12 = vcombine.high %v557_v6, %v558_v7  ;;  %v2796_v14 = vcombine.low %v557_v6, %v558_v7  ;;  %v3184_v21 = vld [vmem:[#allocation5 + $0x28] sm:$0xff]  }
  0x63   :  { %897 = vmatpush1.bf16.msra.mxu0 %v2826_v15  ;;  %2830 = vmatprep.mubr.msk.bf16.mxu0 %vm397_vm0, %v3439_v35  ;;  %v2807_v35 = vcombine.high %v567_v29, %v568_v30  ;;  %v3179_v15 = vld [vmem:[#allocation5 + $0x78] sm:$0xff]   ;;  %v3193_v29 = vld [vmem:[#allocation5 + $0x40] sm:$0xff]  }
  0x64   :  { %898 = vmatprep.subr.bf16.mxu0 %v2825_v20  ;;  %v3183_v20 = vld [vmem:[#allocation5 + $0x68] sm:$0xff]   ;;  %v3194_v30 = vld [vmem:[#allocation5] sm:$0xff]  }
  0x65   :  { %868 = vmatpush1.bf16.msra.mxu1 %v2780_v19  ;;  %v3182_v19 = vld [vmem:[#allocation5 + $0x30] sm:$0xff]  }
  0x66   :  { %869 = vmatprep.subr.bf16.mxu1 %v2811_v23  ;;  %v3186_v23 = vld [vmem:[#allocation5 + $0x20] sm:$0xff]  }
  0x67   :  { %899 = vmatpush1.bf16.msra.mxu0 %v2824_v24  ;;  %v3187_v24 = vld [vmem:[#allocation5 + $0x58] sm:$0xff]  }
  0x68   :  { %900 = vmatprep.subr.bf16.mxu0 %v2823_v28  ;;  %v3192_v28 = vld [vmem:[#allocation5 + $0x8] sm:$0xff]  }
  0x69   :  { %870 = vmatpush2.bf16.msra.mxu1 %v2810_v27  ;;  %v3191_v27 = vld [vmem:[#allocation5 + $0x48] sm:$0xff]  }
  0x6a   :  { %871 = vmatprep.subr.bf16.mxu1 %v2809_v31  ;;  %v3195_v31 = vld [vmem:[#allocation5 + $0xf8] sm:$0xff]  }
  0x6b   :  { %901 = vmatpush1.bf16.msra.mxu0 %v2822_v32  ;;  %v3196_v32 = vld [vmem:[#allocation5 + $0xb8] sm:$0xff]  }
  0x6c   :  { %902 = vmatprep.subr.bf16.mxu0 %v2821_v37  ;;  %v3200_v37 = vld [vmem:[#allocation5 + $0xa8] sm:$0xff]  }
  0x6d   :  { %872 = vmatpush2.bf16.msra.mxu1 %v2808_v36  ;;  %v3199_v36 = vld [vmem:[#allocation5 + $0xe8] sm:$0xff]  }
  0x6e   :  { %873 = vmatprep.subr.bf16.mxu1 %v2807_v35  ;;  %v3203_v35 = vld [vmem:[#allocation5 + $0xd8] sm:$0xff]  }
  0x6f   :  { %903 = vmatpush1.bf16.msra.mxu0 %v2820_v40  ;;  %v3204_v40 = vld [vmem:[#allocation5 + $0x98] sm:$0xff]  }
  0x70   :  { %904 = vmatprep.subr.bf16.mxu0 %v2819_v44  ;;  %v3208_v44 = vld [vmem:[#allocation5 + $0x88] sm:$0xff]  }
  0x71   :  { %874 = vmatpush2.bf16.msra.mxu1 %v2806_v43  ;;  %v3207_v43 = vld [vmem:[#allocation5 + $0xc8] sm:$0xff]  }
  0x72   :  { %875 = vmatprep.subr.bf16.mxu1 %v2805_v47  ;;  %v3466_v47 = vld [vmem:[#allocation2 + $0x1d0] sm:$0xff] }
  0x73   :  { %905 = vmatpush1.bf16.msra.mxu0 %v2818_v48  ;;  %v3468_v48 = vld [vmem:[#allocation2 + $0x1f0] sm:$0xff] }
  0x74   :  { %906 = vmatprep.subr.bf16.mxu0 %v2817_v52  ;;  %v2878_v49 = vcombine.high %v3466_v47, %v3468_v48  ;;  %v2877_v50 = vcombine.low %v3466_v47, %v3468_v48  ;;  %v3476_v52 = vld [vmem:[#allocation2 + $0x5f0] sm:$0xff] }
  0x75   :  { %876 = vmatpush2.bf16.msra.mxu1 %v2804_v51  ;;  %v3474_v51 = vld [vmem:[#allocation2 + $0x5d0] sm:$0xff] }
  0x76   :  { %877 = vmatprep.subr.bf16.mxu1 %v2803_v55  ;;  %v2909_v53 = vcombine.low %v3474_v51, %v3476_v52  ;;  %v2910_v54 = vcombine.high %v3474_v51, %v3476_v52  ;;  %v118_v55 = vlaneseq }
  0x77   :  { %907 = vmatpush1.bf16.msra.mxu0 %v2816_v56 }
  0x78   :  { %908 = vmatprep.subr.bf16.mxu0 %v2815_v60  ;;  %v119_v56 = vshrl.u32 %v118_v55, 7 }
  0x79   :  { %878 = vmatpush2.bf16.msra.mxu1 %v2802_v59 }
  0x7a   :  { %879 = vmatprep.subr.bf16.mxu1 %v2801_v63  ;;  %v3482_v57 = vsub.s32 0, %v119_v56  ;;  %v3487_v59 = vsub.s32 1, %v119_v56 }
  0x7b   :  { %909 = vmatpush1.bf16.msra.mxu0 %v2814_v0 }
  0x7c   :  { %910 = vmatprep.subr.bf16.mxu0 %v2813_v2  ;;  %v121_v61 = vrot.slane %v116_v58, %v3482_v57  ;;  %v125_v62 = vrot.slane %v116_v58, %v3487_v59 }
  0x7d   :  { %880 = vmatpush2.bf16.msra.mxu1 %v2800_v1 }
  0x7e   :  { %881 = vmatprep.subr.bf16.mxu1 %v2799_v3 }
  0x7f   :  { %911 = vmatpush1.bf16.msra.mxu0 %v2812_v8 }
  0x80   :  { %926 = vmatprep.subr.bf16.mxu0 %v2829_v11 }
  0x81   :  { %882 = vmatpush2.bf16.msra.mxu1 %v2798_v9 }
  0x82   :  { %883 = vmatprep.subr.bf16.mxu1 %v2797_v12 }
  0x83   :  { %927 = vmatpush2.bf16.msra.mxu0 %v2828_v13 }
  0x84   :  { %3016 = vmatprep.subr.bf16.mxu0 %v3195_v31 }
  0x85   :  { %884 = vmatpush2.bf16.msra.mxu1 %v2796_v14 }
  0x86   :  { %929 = vmatmul.mubr.bf16.vlgmr.msra.gmra.mxu0 %v3452_v18  ;;  %3038 = vmatprep.subr.bf16.mxu1 %v3179_v15  ;;  %v3188_v18 = vld [vmem:[#allocation5 + $0x18] sm:$0xff]  }
  0x87   :  { %3017 = vmatpush3.bf16.msra.mxu0 %v3196_v32 }
  0x88   :  { %886 = vmatmul.mubr.bf16.vlgmr.msra.gmra.mxu1 %v3459_v10  ;;  %3018 = vmatprep.subr.bf16.mxu0 %v3197_v33 }
  0x89   :  { %3039 = vmatpush3.bf16.msra.mxu1 %v3180_v16 }
  0x8a   :  { %3040 = vmatprep.subr.bf16.mxu1 %v3181_v17 }
  0x8b   :  { %3019 = vmatpush3.bf16.msra.mxu0 %v3198_v34  ;;  %v591_v34 = vld [vmem:[%s3649_s2 + $0x2] sm:$0x3] }
  0x8c   :  { %3020 = vmatprep.subr.bf16.mxu0 %v3199_v36  ;;  %v1311_v36 = vld [vmem:[#allocation2 + $0x590] sm:$0xff] }
  0x8d   :  { %3041 = vmatpush3.bf16.msra.mxu1 %v3182_v19 }
  0x8e   :  { %3042 = vmatprep.subr.bf16.mxu1 %v3183_v20 }
  0x8f   :  { %3021 = vmatpush3.bf16.msra.mxu0 %v3200_v37  ;;  %v1312_v37 = vld [vmem:[#allocation2 + $0x5b0] sm:$0xff] }
  0x90   :  { %3022 = vmatprep.subr.bf16.mxu0 %v3201_v38 }
  0x91   :  { %3043 = vmatpush3.bf16.msra.mxu1 %v3184_v21 }
  0x92   :  { %3044 = vmatprep.subr.bf16.mxu1 %v3185_v22 }
  0x93   :  { %3023 = vmatpush3.bf16.msra.mxu0 %v3202_v39 }
  0x94   :  { %3024 = vmatprep.subr.bf16.mxu0 %v3203_v35 }
  0x95   :  { %3045 = vmatpush3.bf16.msra.mxu1 %v3186_v23 }
  0x96   :  { %3046 = vmatprep.subr.bf16.mxu1 %v3187_v24 }
  0x97   :  { %3025 = vmatpush3.bf16.msra.mxu0 %v3204_v40  ;;  %v596_v40 = vrot.slane %v591_v34, %v3482_v57 }
  0x98   :  { %3026 = vmatprep.subr.bf16.mxu0 %v3205_v41  ;;  %v2908_v41 = vcombine.high %v1311_v36, %v1312_v37 }
  0x99   :  { %3047 = vmatpush3.bf16.msra.mxu1 %v3188_v18 }
  0x9a   :  { %3048 = vmatprep.subr.bf16.mxu1 %v3189_v25 }
  0x9b   :  { %3027 = vmatpush3.bf16.msra.mxu0 %v3206_v42  ;;  %v1309_v42 = vld [vmem:[#allocation2 + $0x550] sm:$0xff] }
  0x9c   :  { %3028 = vmatprep.subr.bf16.mxu0 %v3207_v43  ;;  %v1310_v43 = vld [vmem:[#allocation2 + $0x570] sm:$0xff] }
  0x9d   :  { %3049 = vmatpush3.bf16.msra.mxu1 %v3190_v26  ;;  %v2906_v58 = vcombine.high %v1309_v42, %v1310_v43 }
  0x9e   :  { %3050 = vmatprep.subr.bf16.mxu1 %v3191_v27 }
  0x9f   :  { %3029 = vmatpush3.bf16.msra.mxu0 %v3208_v44 }
  0xa0   :  { %3030 = vmatprep.subr.bf16.mxu0 %v3209_v45  ;;  %v600_v45 = vrot.slane %v591_v34, %v3487_v59 }
  0xa1   :  { %3051 = vmatpush3.bf16.msra.mxu1 %v3192_v28 }
  0xa2   :  { %3052 = vmatprep.subr.bf16.mxu1 %v3193_v29 }
  0xa3   :  { %3031 = vmatpush3.bf16.msra.mxu0 %v3210_v46 }
  0xa4   :  { %1579 = vmatprep.subr.bf16.mxu0 %v2878_v49  ;;  %v2907_v49 = vcombine.low %v1311_v36, %v1312_v37 }
  0xa5   :  { %3053 = vmatpush3.bf16.msra.mxu1 %v3194_v30 }
  0xa6   :  { %1622 = vmatprep.subr.bf16.mxu1 %v2910_v54  ;;  %v3502_v54 = vld [vmem:[%s3647_s0 + $0xc] ss:$16 sps:$4 sm:$0xff]  }
 0x108   :  { %v478_v60 = vpop.f32.mrf.mxu1 }
 0x10a   :  { %v480_v63 = vpop.f32.mrf.mxu1 }
 0x10c   :  { %v482_v5 = vpop.f32.mrf.mxu1 }
 0x10e   :  { %v484_v15 = vpop.f32.mrf.mxu1 }
 0x122   :  { %v435_v0 = vpop.f32.mrf.mxu0 }
 0x123   :  { %v436_v1 = vadd.f32 %v435_v0, %v121_v61  ;;  %v2905_v0 = vcombine.low %v1309_v42, %v1310_v43 }
 0x124   :  { %v437_v2 = vpop.f32.mrf.mxu0 }
 0x125   :  { %v479_v3 = vadd.f32 %v478_v60, %v436_v1  ;;  %v438_v4 = vadd.f32 %v437_v2, %v125_v62 }
 0x126   :  { %v439_v6 = vpop.f32.mrf.mxu0 }
 0x127   :  { %v487_v7 = vmul.f32 0.5, %v479_v3  ;;  %v481_v8 = vadd.f32 %v480_v63, %v438_v4  ;;  %v440_v9 = vadd.f32 %v439_v6, %v121_v61  ;;  %v1307_v61 = vld [vmem:[#allocation2 + $0x510] sm:$0xff] }
 0x128   :  { %v441_v11 = vpop.f32.mrf.mxu0  ;;  %v1305_v6 = vld [vmem:[#allocation2 + $0x4d0] sm:$0xff] }
 0x129   :  { %v488_v12 = vmul.f32 0.5, %v481_v8  ;;  %v483_v13 = vadd.f32 %v482_v5, %v440_v9  ;;  %v442_v14 = vadd.f32 %v441_v11, %v125_v62  ;;  %3259 = vtanh.f32 %v487_v7  ;;  %v1308_v62 = vld [vmem:[#allocation2 + $0x530] sm:$0xff] }
 0x12a   :  { %v2904_v4 = vcombine.high %v1307_v61, %v1308_v62  ;;  %v1306_v7 = vld [vmem:[#allocation2 + $0x4f0] sm:$0xff] }
 0x12b   :  { %3261 = vtanh.f32 %v488_v12  ;;  %v489_v16 = vmul.f32 0.5, %v483_v13  ;;  %v485_v17 = vadd.f32 %v484_v15, %v442_v14 }
 0x12d   :  { %3263 = vtanh.f32 %v489_v16  ;;  %v490_v19 = vmul.f32 0.5, %v485_v17  ;;  %v2902_v16 = vcombine.high %v1305_v6, %v1306_v7 }
 0x12f   :  { %3265 = vtanh.f32 %v490_v19  ;;  %v1304_v19 = vld [vmem:[#allocation2 + $0x4b0] sm:$0xff] }
 0x136   :  { %v3260_v20 = vpop.eup %3259 }
 0x137   :  { %v495_v24 = vadd.f32 1.0, %v3260_v20 }
 0x138   :  { %v3262_v21 = vpop.eup %3261 }
 0x139   :  { %v496_v22 = vadd.f32 1.0, %v3262_v21  ;;  %v499_v29 = vmul.f32 0.5, %v495_v24  ;;  %v2901_v21 = vcombine.low %v1305_v6, %v1306_v7  ;;  %v1302_v24 = vld [vmem:[#allocation2 + $0x470] sm:$0xff] }
 0x13a   :  { %v3264_v23 = vpop.eup %3263 }
 0x13b   :  { %v497_v18 = vadd.f32 1.0, %v3264_v23  ;;  %v500_v26 = vmul.f32 0.5, %v496_v22  ;;  %v503_v38 = vmul.f32 %v499_v29, %v479_v3  ;;  %v1301_v23 = vld [vmem:[#allocation2 + $0x450] sm:$0xff] }
 0x13c   :  { %v3266_v25 = vpop.eup %3265 }
 0x13d   :  { %v501_v27 = vmul.f32 0.5, %v497_v18  ;;  %v498_v28 = vadd.f32 1.0, %v3266_v25  ;;  %v504_v32 = vmul.f32 %v500_v26, %v481_v8  ;;  %v2898_v25 = vcombine.high %v1301_v23, %v1302_v24  ;;  %v1299_v26 = vld [vmem:[#allocation2 + $0x410] sm:$0xff] }
 0x13f   :  { %v502_v30 = vmul.f32 0.5, %v498_v28  ;;  %v505_v31 = vmul.f32 %v501_v27, %v483_v13  ;;  %v2903_v13 = vcombine.low %v1307_v61, %v1308_v62  ;;  %v1300_v27 = vld [vmem:[#allocation2 + $0x430] sm:$0xff]  ;;  %v2897_v28 = vcombine.low %v1301_v23, %v1302_v24 }
 0x140   :  { %v1297_v23 = vld [vmem:[#allocation2 + $0x3d0] sm:$0xff] }
 0x141   :  { %v506_v33 = vmul.f32 %v502_v30, %v485_v17  ;;  %v507_v35 = vpack.c.bf16 %v505_v31, %v503_v38  ;;  %v1303_v17 = vld [vmem:[#allocation2 + $0x490] sm:$0xff]  ;;  %v2896_v30 = vcombine.high %v1299_v26, %v1300_v27  ;;  %v2895_v38 = vcombine.low %v1299_v26, %v1300_v27 }
 0x142   :  { %v2900_v22 = vcombine.high %v1303_v17, %v1304_v19  ;;  %v2899_v18 = vcombine.low %v1303_v17, %v1304_v19  ;;  %v1267_v19 = vld [vmem:[#allocation2 + $0x10] sm:$0xff] }
 0x143   :  { %v508_v39 = vpack.c.bf16 %v506_v33, %v504_v32  ;;  %v1315_v32 = vld [vmem:[#allocation2 + $0x610] sm:$0xff] }
 0x144   :  { %v1316_v33 = vld [vmem:[#allocation2 + $0x630] sm:$0xff] }
 0x145   :  { %1258 = vmatprep.mubr.bf16.mxu1 %v508_v39  ;;  %v1298_v24 = vld [vmem:[#allocation2 + $0x3f0] sm:$0xff] }
 0x146   :  { %v930_v44 = vpop.f32.mrf.mxu0  ;;  %1259 = vmatmul.mubr.bf16.vlgmr.msra.gmra.mxu1 %v507_v35  ;;  %v2912_v35 = vcombine.high %v1315_v32, %v1316_v33  ;;  %v1295_v26 = vld [vmem:[#allocation2 + $0x390] sm:$0xff] }
 0x147   :  { %1623 = vmatpush1.bf16.msra.mxu1 %v2909_v53  ;;  %2913 = vmatprep.mubr.msk.bf16.mxu1 %vm397_vm0, %v3502_v54  ;;  %v1296_v27 = vld [vmem:[#allocation2 + $0x3b0] sm:$0xff] }
 0x148   :  { %v887_v46 = vpop.f32.mrf.mxu1  ;;  %v932_v56 = vpop.f32.mrf.mxu0  ;;  %1624 = vmatprep.subr.bf16.mxu1 %v2908_v41 }
 0x149   :  { %v888_v55 = vadd.f32 %v887_v46, %v596_v40 }
 0x14a   :  { %v889_v60 = vpop.f32.mrf.mxu1  ;;  %v934_v53 = vpop.f32.mrf.mxu0 }
 0x14b   :  { %v3506_v63 = vadd.f32 %v930_v44, %v888_v55  ;;  %v890_v51 = vadd.f32 %v889_v60, %v600_v45  ;;  %1625 = vmatpush1.bf16.msra.mxu1 %v2907_v49  ;;  %v1280_v60 = vld [vmem:[#allocation2 + $0x1b0] sm:$0xff] }
 0x14c   :  { %v891_v52 = vpop.f32.mrf.mxu1  ;;  %1626 = vmatprep.subr.bf16.mxu1 %v2906_v58  ;;  %v936_v12 = vpop.f32.mrf.mxu0  ;;  %v1279_v58 = vld [vmem:[#allocation2 + $0x190] sm:$0xff] }
 0x14d   :  { %v939_v1 = vmul.f32 0.5, %v3506_v63  ;;  %v933_v2 = vadd.f32 %v932_v56, %v890_v51  ;;  %v892_v3 = vadd.f32 %v891_v52, %v596_v40  ;;  %v2876_v52 = vcombine.high %v1279_v58, %v1280_v60 }
 0x14e   :  { %v893_v5 = vpop.f32.mrf.mxu1 }
 0x14f   :  { %v940_v8 = vmul.f32 0.5, %v933_v2  ;;  %v935_v9 = vadd.f32 %v934_v53, %v892_v3  ;;  %v894_v11 = vadd.f32 %v893_v5, %v600_v45  ;;  %3267 = vtanh.f32 %v939_v1  ;;  %1627 = vmatpush1.bf16.msra.mxu1 %v2905_v0  ;;  %v1277_v53 = vld [vmem:[#allocation2 + $0x150] sm:$0xff]  ;;  %v3513_v1 = vld [vmem:[%s3647_s0 + $0x8] ss:$16 sps:$4 sm:$0xff]  }
 0x150   :  { %1628 = vmatprep.subr.bf16.mxu1 %v2904_v4  ;;  %v2911_v45 = vcombine.low %v1315_v32, %v1316_v33  ;;  %v1278_v0 = vld [vmem:[#allocation2 + $0x170] sm:$0xff]  ;;  %v2891_v32 = vcombine.low %v1295_v26, %v1296_v27 }
 0x151   :  { %3269 = vtanh.f32 %v940_v8  ;;  %v941_v14 = vmul.f32 0.5, %v935_v9  ;;  %v937_v15 = vadd.f32 %v936_v12, %v894_v11  ;;  %v2874_v3 = vcombine.high %v1277_v53, %v1278_v0  ;;  %v1275_v4 = vld [vmem:[#allocation2 + $0x110] sm:$0xff] }
 0x152   :  { %v1276_v5 = vld [vmem:[#allocation2 + $0x130] sm:$0xff]  ;;  %v2873_v6 = vcombine.low %v1277_v53, %v1278_v0  ;;  %v1873_v53 = vld [vmem:[#allocation2 + $0x1f8] sm:$0xff] }
 0x153   :  { %3271 = vtanh.f32 %v941_v14  ;;  %v942_v20 = vmul.f32 0.5, %v937_v15  ;;  %1629 = vmatpush1.bf16.msra.mxu1 %v2903_v13  ;;  %v2872_v7 = vcombine.high %v1275_v4, %v1276_v5  ;;  %v1273_v8 = vld [vmem:[#allocation2 + $0xd0] sm:$0xff]  ;;  %v2871_v47 = vcombine.low %v1275_v4, %v1276_v5  ;;  %v1871_v4 = vld [vmem:[#allocation2 + $0x1b8] sm:$0xff] }
 0x154   :  { %1630 = vmatprep.subr.bf16.mxu1 %v2902_v16  ;;  %v1272_v11 = vld [vmem:[#allocation2 + $0xb0] sm:$0xff]  ;;  %v3211_v5 = vld [vmem:[#allocation5 + $0x178] sm:$0xff]  }
 0x155   :  { %3273 = vtanh.f32 %v942_v20  ;;  %v1269_v14 = vld [vmem:[#allocation2 + $0x50] sm:$0xff] }
 0x156   :  { %v1268_v20 = vld [vmem:[#allocation2 + $0x30] sm:$0xff] }
 0x157   :  { %1631 = vmatpush1.bf16.msra.mxu1 %v2901_v21 }
 0x158   :  { %1632 = vmatprep.subr.bf16.mxu1 %v2900_v22  ;;  %v2864_v22 = vcombine.high %v1267_v19, %v1268_v20 }
 0x15b   :  { %1633 = vmatpush1.bf16.msra.mxu1 %v2899_v18  ;;  %v2863_v18 = vcombine.low %v1267_v19, %v1268_v20  ;;  %v1865_v19 = vld [vmem:[#allocation2 + $0xf8] sm:$0xff]  ;;  %v3217_v20 = vld [vmem:[#allocation5 + $0x160] sm:$0xff]  }
 0x15c   :  { %v3268_v29 = vpop.eup %3267  ;;  %1634 = vmatprep.subr.bf16.mxu1 %v2898_v25  ;;  %v2894_v25 = vcombine.high %v1297_v23, %v1298_v24 }
 0x15d   :  { %v947_v37 = vadd.f32 1.0, %v3268_v29  ;;  %v2892_v29 = vcombine.high %v1295_v26, %v1296_v27 }
 0x15e   :  { %v3270_v31 = vpop.eup %3269 }
 0x15f   :  { %v948_v34 = vadd.f32 1.0, %v3270_v31  ;;  %1635 = vmatpush1.bf16.msra.mxu1 %v2897_v28  ;;  %v951_v44 = vmul.f32 0.5, %v947_v37  ;;  %v2893_v28 = vcombine.low %v1297_v23, %v1298_v24  ;;  %v1294_v31 = vld [vmem:[#allocation2 + $0x370] sm:$0xff]  ;;  %v3218_v23 = vld [vmem:[#allocation5 + $0x120] sm:$0xff]   ;;  %v1862_v24 = vld [vmem:[#allocation2 + $0x98] sm:$0xff] }
 0x160   :  { %v3272_v36 = vpop.eup %3271  ;;  %1636 = vmatprep.subr.bf16.mxu1 %v2896_v30  ;;  %v1293_v30 = vld [vmem:[#allocation2 + $0x350] sm:$0xff] }
 0x161   :  { %v949_v39 = vadd.f32 1.0, %v3272_v36  ;;  %v952_v41 = vmul.f32 0.5, %v948_v34  ;;  %v955_v61 = vmul.f32 %v951_v44, %v3506_v63  ;;  %v2875_v63 = vcombine.low %v1279_v58, %v1280_v60  ;;  %v1291_v34 = vld [vmem:[#allocation2 + $0x310] sm:$0xff] }
 0x162   :  { %v3274_v40 = vpop.eup %3273  ;;  %v2890_v33 = vcombine.high %v1293_v30, %v1294_v31  ;;  %v1292_v36 = vld [vmem:[#allocation2 + $0x330] sm:$0xff]  ;;  %v2889_v37 = vcombine.low %v1293_v30, %v1294_v31  ;;  %v1861_v30 = vld [vmem:[#allocation2 + $0x78] sm:$0xff] }
 0x163   :  { %v953_v42 = vmul.f32 0.5, %v949_v39  ;;  %v950_v43 = vadd.f32 1.0, %v3274_v40  ;;  %1637 = vmatpush1.bf16.msra.mxu1 %v2895_v38  ;;  %v956_v55 = vmul.f32 %v952_v41, %v933_v2  ;;  %v3522_v2 = vld [vmem:[%s3647_s0 + $0x4] ss:$16 sps:$4 sm:$0xff]   ;;  %v2888_v38 = vcombine.high %v1291_v34, %v1292_v36 }
 0x164   :  { %1652 = vmatprep.subr.bf16.mxu1 %v2912_v35  ;;  %v1289_v39 = vld [vmem:[#allocation2 + $0x2d0] sm:$0xff]  ;;  %v2887_v40 = vcombine.low %v1291_v34, %v1292_v36  ;;  %v1858_v36 = vld [vmem:[#allocation2 + $0x18] sm:$0xff] }
 0x165   :  { %v954_v46 = vmul.f32 0.5, %v950_v43  ;;  %v957_v49 = vmul.f32 %v953_v42, %v935_v9  ;;  %v1274_v9 = vld [vmem:[#allocation2 + $0xf0] sm:$0xff] }
 0x166   :  { %v2870_v48 = vcombine.high %v1273_v8, %v1274_v9  ;;  %v2869_v12 = vcombine.low %v1273_v8, %v1274_v9  ;;  %v1290_v35 = vld [vmem:[#allocation2 + $0x2f0] sm:$0xff]  ;;  %v3212_v8 = vld [vmem:[#allocation5 + $0x138] sm:$0xff]  }
 0x167   :  { %v958_v56 = vmul.f32 %v954_v46, %v937_v15  ;;  %1653 = vmatpush2.bf16.msra.mxu1 %v2911_v45  ;;  %v959_v51 = vpack.c.bf16 %v957_v49, %v955_v61  ;;  %v1270_v15 = vld [vmem:[#allocation2 + $0x70] sm:$0xff]  ;;  %v2886_v41 = vcombine.high %v1289_v39, %v1290_v35  ;;  %v2885_v44 = vcombine.low %v1289_v39, %v1290_v35  ;;  %v1868_v9 = vld [vmem:[#allocation2 + $0x158] sm:$0xff] }
 0x168   :  { %v2866_v17 = vcombine.high %v1269_v14, %v1270_v15  ;;  %v2865_v21 = vcombine.low %v1269_v14, %v1270_v15  ;;  %v1287_v42 = vld [vmem:[#allocation2 + $0x290] sm:$0xff]  ;;  %3060 = vmatprep.subr.bf16.mxu1 %v3211_v5  ;;  %v1884_v5 = vld [vmem:[#allocation2 + $0x358] sm:$0xff] }
 0x169   :  { %v960_v62 = vpack.c.bf16 %v958_v56, %v956_v55  ;;  %v1288_v43 = vld [vmem:[#allocation2 + $0x2b0] sm:$0xff] }
 0x16a   :  { %1655 = vmatmul.mubr.bf16.vlgmr.msra.gmra.mxu1 %v3513_v1  ;;  %v2884_v45 = vcombine.high %v1287_v42, %v1288_v43  ;;  %v1285_v46 = vld [vmem:[#allocation2 + $0x250] sm:$0xff]  ;;  %v2883_v55 = vcombine.low %v1287_v42, %v1288_v43  ;;  %v1888_v42 = vld [vmem:[#allocation2 + $0x3d8] sm:$0xff] }
 0x16b   :  { %1121 = vmatprep.mubr.bf16.mxu0 %v960_v62  ;;  %v1286_v49 = vld [vmem:[#allocation2 + $0x270] sm:$0xff]  ;;  %3061 = vmatpush3.bf16.msra.mxu1 %v3212_v8  ;;  %v1889_v43 = vld [vmem:[#allocation2 + $0x3f8] sm:$0xff] }
 0x16c   :  { %1122 = vmatmul.mubr.bf16.vlgmr.msra.gmra.mxu0 %v959_v51  ;;  %v2882_v56 = vcombine.high %v1285_v46, %v1286_v49  ;;  %v1283_v58 = vld [vmem:[#allocation2 + $0x210] sm:$0xff]  ;;  %v2881_v61 = vcombine.low %v1285_v46, %v1286_v49  ;;  %v2961_v46 = vcombine.high %v1888_v42, %v1889_v43 }
 0x16d   :  { %1580 = vmatpush1.bf16.msra.mxu0 %v2877_v50  ;;  %1611 = vmatprep.mubr.bf16.mxu0 %v3522_v2  ;;  %v1271_v50 = vld [vmem:[#allocation2 + $0x90] sm:$0xff] }
 0x16e   :  { %1581 = vmatprep.subr.bf16.mxu0 %v2876_v52  ;;  %v2868_v13 = vcombine.high %v1271_v50, %v1272_v11  ;;  %v2867_v16 = vcombine.low %v1271_v50, %v1272_v11  ;;  %v1284_v60 = vld [vmem:[#allocation2 + $0x230] sm:$0xff]  ;;  %v1872_v52 = vld [vmem:[#allocation2 + $0x1d8] sm:$0xff] }
 0x16f   :  { %v2880_v62 = vcombine.high %v1283_v58, %v1284_v60  ;;  %v2879_v51 = vcombine.low %v1283_v58, %v1284_v60  ;;  %v2944_v0 = vcombine.low %v1872_v52, %v1873_v53  ;;  %v3214_v50 = vld [vmem:[#allocation5 + $0x130] sm:$0xff]   ;;  %v1866_v11 = vld [vmem:[#allocation2 + $0x118] sm:$0xff] }
 0x170   :  { %v3221_v31 = vld [vmem:[#allocation5 + $0x150] sm:$0xff]   ;;  %v1886_v60 = vld [vmem:[#allocation2 + $0x398] sm:$0xff] }
 0x171   :  { %1582 = vmatpush1.bf16.msra.mxu0 %v2875_v63  ;;  %v2945_v63 = vcombine.high %v1872_v52, %v1873_v53  ;;  %v3222_v34 = vld [vmem:[#allocation5 + $0x110] sm:$0xff]   ;;  %v3531_v53 = vld [vmem:[#allocation2 + $0x5f8] sm:$0xff] }
 0x172   :  { %1583 = vmatprep.subr.bf16.mxu0 %v2874_v3  ;;  %v1870_v3 = vld [vmem:[#allocation2 + $0x198] sm:$0xff] }
 0x175   :  { %1584 = vmatpush1.bf16.msra.mxu0 %v2873_v6  ;;  %v2943_v6 = vcombine.high %v1870_v3, %v1871_v4 }
 0x176   :  { %1585 = vmatprep.subr.bf16.mxu0 %v2872_v7  ;;  %v2942_v7 = vcombine.low %v1870_v3, %v1871_v4 }
 0x179   :  { %1586 = vmatpush1.bf16.msra.mxu0 %v2871_v47  ;;  %v3213_v47 = vld [vmem:[#allocation5 + $0x170] sm:$0xff]  }
 0x17a   :  { %1587 = vmatprep.subr.bf16.mxu0 %v2870_v48  ;;  %3062 = vmatprep.subr.bf16.mxu1 %v3213_v47 }
 0x17b   :  { %3063 = vmatpush3.bf16.msra.mxu1 %v3214_v50  ;;  %v1881_v50 = vld [vmem:[#allocation2 + $0x2f8] sm:$0xff] }
 0x17d   :  { %1588 = vmatpush1.bf16.msra.mxu0 %v2869_v12  ;;  %v1867_v12 = vld [vmem:[#allocation2 + $0x138] sm:$0xff] }
 0x17e   :  { %1589 = vmatprep.subr.bf16.mxu0 %v2868_v13  ;;  %v3215_v13 = vld [vmem:[#allocation5 + $0x168] sm:$0xff]   ;;  %v2939_v14 = vcombine.high %v1866_v11, %v1867_v12  ;;  %v2938_v15 = vcombine.low %v1866_v11, %v1867_v12 }
 0x17f   :  { %3064 = vmatprep.subr.bf16.mxu1 %v3215_v13  ;;  %v1878_v13 = vld [vmem:[#allocation2 + $0x298] sm:$0xff] }
 0x181   :  { %1590 = vmatpush1.bf16.msra.mxu0 %v2867_v16  ;;  %v3216_v16 = vld [vmem:[#allocation5 + $0x128] sm:$0xff]  }
 0x182   :  { %1591 = vmatprep.subr.bf16.mxu0 %v2866_v17  ;;  %3065 = vmatpush3.bf16.msra.mxu1 %v3216_v16  ;;  %v1864_v17 = vld [vmem:[#allocation2 + $0xd8] sm:$0xff] }
 0x183   :  { %3066 = vmatprep.subr.bf16.mxu1 %v3217_v20 }
 0x185   :  { %1592 = vmatpush1.bf16.msra.mxu0 %v2865_v21  ;;  %v2937_v21 = vcombine.high %v1864_v17, %v1865_v19 }
 0x186   :  { %1593 = vmatprep.subr.bf16.mxu0 %v2864_v22  ;;  %v2936_v22 = vcombine.low %v1864_v17, %v1865_v19  ;;  %3067 = vmatpush3.bf16.msra.mxu1 %v3218_v23  ;;  %v1876_v17 = vld [vmem:[#allocation2 + $0x258] sm:$0xff] }
 0x187   :  { %v1877_v19 = vld [vmem:[#allocation2 + $0x278] sm:$0xff] }
 0x188   :  { %v2948_v20 = vcombine.low %v1876_v17, %v1877_v19  ;;  %v1875_v23 = vld [vmem:[#allocation2 + $0x238] sm:$0xff] }
 0x189   :  { %1594 = vmatpush1.bf16.msra.mxu0 %v2863_v18  ;;  %v1863_v18 = vld [vmem:[#allocation2 + $0xb8] sm:$0xff] }
 0x18a   :  { %1595 = vmatprep.subr.bf16.mxu0 %v2894_v25  ;;  %v3219_v25 = vld [vmem:[#allocation5 + $0x158] sm:$0xff]   ;;  %v2935_v26 = vcombine.high %v1862_v24, %v1863_v18  ;;  %v2934_v27 = vcombine.low %v1862_v24, %v1863_v18 }
 0x18b   :  { %3068 = vmatprep.subr.bf16.mxu1 %v3219_v25 }
 0x18d   :  { %1596 = vmatpush2.bf16.msra.mxu0 %v2893_v28  ;;  %v3220_v28 = vld [vmem:[#allocation5 + $0x118] sm:$0xff]  }
 0x18e   :  { %1597 = vmatprep.subr.bf16.mxu0 %v2892_v29  ;;  %3069 = vmatpush3.bf16.msra.mxu1 %v3220_v28  ;;  %v1860_v29 = vld [vmem:[#allocation2 + $0x58] sm:$0xff] }
 0x18f   :  { %3070 = vmatprep.subr.bf16.mxu1 %v3221_v31 }
 0x191   :  { %1598 = vmatpush2.bf16.msra.mxu0 %v2891_v32  ;;  %v2933_v32 = vcombine.high %v1860_v29, %v1861_v30 }
 0x192   :  { %1599 = vmatprep.subr.bf16.mxu0 %v2890_v33  ;;  %v2932_v33 = vcombine.low %v1860_v29, %v1861_v30  ;;  %3071 = vmatpush3.bf16.msra.mxu1 %v3222_v34  ;;  %v1317_v34 = vld [vmem:[%s3649_s2 + $0x4] sm:$0x3] }
 0x195   :  { %1600 = vmatpush2.bf16.msra.mxu0 %v2889_v37  ;;  %v1859_v37 = vld [vmem:[#allocation2 + $0x38] sm:$0xff] }
 0x196   :  { %1601 = vmatprep.subr.bf16.mxu0 %v2888_v38  ;;  %v3223_v38 = vld [vmem:[#allocation5 + $0x148] sm:$0xff]   ;;  %v2931_v39 = vcombine.high %v1858_v36, %v1859_v37  ;;  %v2930_v35 = vcombine.low %v1858_v36, %v1859_v37  ;;  %v1322_v37 = vrot.slane %v1317_v34, %v3482_v57 }
 0x197   :  { %3072 = vmatprep.subr.bf16.mxu1 %v3223_v38  ;;  %v1326_v38 = vrot.slane %v1317_v34, %v3487_v59 }
 0x199   :  { %1602 = vmatpush2.bf16.msra.mxu0 %v2887_v40  ;;  %v3224_v40 = vld [vmem:[#allocation5 + $0x108] sm:$0xff]  }
 0x19a   :  { %1603 = vmatprep.subr.bf16.mxu0 %v2886_v41  ;;  %3073 = vmatpush3.bf16.msra.mxu1 %v3224_v40 }
 0x19d   :  { %1604 = vmatpush2.bf16.msra.mxu0 %v2885_v44 }
 0x19e   :  { %1605 = vmatprep.subr.bf16.mxu0 %v2884_v45  ;;  %v3225_v45 = vld [vmem:[#allocation5 + $0x140] sm:$0xff]  }
 0x19f   :  { %3074 = vmatprep.subr.bf16.mxu1 %v3225_v45 }
 0x1a1   :  { %1606 = vmatpush2.bf16.msra.mxu0 %v2883_v55  ;;  %v2960_v55 = vcombine.low %v1888_v42, %v1889_v43 }
 0x1a2   :  { %1607 = vmatprep.subr.bf16.mxu0 %v2882_v56  ;;  %v3226_v56 = vld [vmem:[#allocation5 + $0x100] sm:$0xff]  }
 0x1a3   :  { %3075 = vmatpush3.bf16.msra.mxu1 %v3226_v56 }
 0x1a5   :  { %1608 = vmatpush2.bf16.msra.mxu0 %v2881_v61  ;;  %v1887_v61 = vld [vmem:[#allocation2 + $0x3b8] sm:$0xff] }
 0x1a6   :  { %1609 = vmatprep.subr.bf16.mxu0 %v2880_v62  ;;  %v3529_v62 = vld [vmem:[#allocation2 + $0x5d8] sm:$0xff]  ;;  %v2959_v52 = vcombine.high %v1886_v60, %v1887_v61 }
 0x1a7   :  { %v2976_v3 = vcombine.low %v3529_v62, %v3531_v53  ;;  %v2977_v4 = vcombine.high %v3529_v62, %v3531_v53  ;;  %v1894_v62 = vld [vmem:[#allocation2 + $0x498] sm:$0xff] }
 0x1a8   :  { %v1895_v53 = vld [vmem:[#allocation2 + $0x4b8] sm:$0xff] }
 0x1a9   :  { %1610 = vmatpush2.bf16.msra.mxu0 %v2879_v51  ;;  %2213 = vmatprep.subr.bf16.mxu1 %v2977_v4 }
 0x1aa   :  { %2170 = vmatprep.subr.bf16.mxu0 %v2945_v63  ;;  %v2958_v63 = vcombine.low %v1886_v60, %v1887_v61 }
 0x1ac   :  { %1612 = vmatmul.mubr.bf16.vlgmr.msra.gmra.mxu0 %v3459_v10  ;;  %v1869_v10 = vld [vmem:[#allocation2 + $0x178] sm:$0xff] }
 0x1ad   :  { %2202 = vmatprep.mubr.bf16.mxu0 %v3522_v2  ;;  %2171 = vmatpush1.bf16.msra.mxu0 %v2944_v0  ;;  %v2941_v2 = vcombine.high %v1868_v9, %v1869_v10  ;;  %v2940_v48 = vcombine.low %v1868_v9, %v1869_v10  ;;  %v1882_v9 = vld [vmem:[#allocation2 + $0x318] sm:$0xff] }
 0x1ae   :  { %2172 = vmatprep.subr.bf16.mxu0 %v2943_v6  ;;  %v1885_v6 = vld [vmem:[#allocation2 + $0x378] sm:$0xff] }
 0x1af   :  { %v2957_v8 = vcombine.high %v1884_v5, %v1885_v6  ;;  %v1883_v10 = vld [vmem:[#allocation2 + $0x338] sm:$0xff] }
 0x1b0   :  { %v2954_v47 = vcombine.low %v1882_v9, %v1883_v10 }
 0x1b1   :  { %2173 = vmatpush1.bf16.msra.mxu0 %v2942_v7  ;;  %v2956_v7 = vcombine.low %v1884_v5, %v1885_v6 }
 0x1b2   :  { %2174 = vmatprep.subr.bf16.mxu0 %v2941_v2  ;;  %v2955_v2 = vcombine.high %v1882_v9, %v1883_v10 }
 0x1b5   :  { %2175 = vmatpush1.bf16.msra.mxu0 %v2940_v48  ;;  %v1880_v48 = vld [vmem:[#allocation2 + $0x2d8] sm:$0xff] }
 0x1b6   :  { %2176 = vmatprep.subr.bf16.mxu0 %v2939_v14  ;;  %v2952_v11 = vcombine.low %v1880_v48, %v1881_v50  ;;  %v2953_v12 = vcombine.high %v1880_v48, %v1881_v50  ;;  %v1879_v14 = vld [vmem:[#allocation2 + $0x2b8] sm:$0xff] }
 0x1b7   :  { %v2951_v16 = vcombine.high %v1878_v13, %v1879_v14 }
 0x1b9   :  { %2177 = vmatpush1.bf16.msra.mxu0 %v2938_v15  ;;  %v2950_v15 = vcombine.low %v1878_v13, %v1879_v14 }
 0x1ba   :  { %2178 = vmatprep.subr.bf16.mxu0 %v2937_v21  ;;  %v2949_v21 = vcombine.high %v1876_v17, %v1877_v19 }
 0x1bd   :  { %2179 = vmatpush1.bf16.msra.mxu0 %v2936_v22  ;;  %v1874_v22 = vld [vmem:[#allocation2 + $0x218] sm:$0xff] }
 0x1be   :  { %2180 = vmatprep.subr.bf16.mxu0 %v2935_v26  ;;  %v2946_v24 = vcombine.low %v1874_v22, %v1875_v23  ;;  %v2947_v18 = vcombine.high %v1874_v22, %v1875_v23  ;;  %v3302_v26 = vld [vmem:[%s3647_s0] ss:$16 sps:$4 sm:$0xff]   ;;  %v1900_v22 = vld [vmem:[#allocation2 + $0x558] sm:$0xff] }
 0x1bf   :  { %v1901_v23 = vld [vmem:[#allocation2 + $0x578] sm:$0xff] }
 0x1c1   :  { %2181 = vmatpush1.bf16.msra.mxu0 %v2934_v27 }
 0x1c2   :  { %2182 = vmatprep.subr.bf16.mxu0 %v2933_v32 }
 0x1c5   :  { %2183 = vmatpush1.bf16.msra.mxu0 %v2932_v33 }
 0x1c6   :  { %2184 = vmatprep.subr.bf16.mxu0 %v2931_v39 }
 0x1c9   :  { %2185 = vmatpush1.bf16.msra.mxu0 %v2930_v35 }
 0x1ca   :  { %2186 = vmatprep.subr.bf16.mxu0 %v2961_v46 }
 0x1cd   :  { %2187 = vmatpush2.bf16.msra.mxu0 %v2960_v55 }
 0x1ce   :  { %2188 = vmatprep.subr.bf16.mxu0 %v2959_v52 }
 0x1d1   :  { %2189 = vmatpush2.bf16.msra.mxu0 %v2958_v63 }
 0x1d2   :  { %2190 = vmatprep.subr.bf16.mxu0 %v2957_v8 }
 0x1d5   :  { %2191 = vmatpush2.bf16.msra.mxu0 %v2956_v7 }
 0x1d6   :  { %2192 = vmatprep.subr.bf16.mxu0 %v2955_v2 }
 0x1d9   :  { %2193 = vmatpush2.bf16.msra.mxu0 %v2954_v47 }
 0x1da   :  { %2194 = vmatprep.subr.bf16.mxu0 %v2953_v12 }
 0x1dd   :  { %2195 = vmatpush2.bf16.msra.mxu0 %v2952_v11 }
 0x1de   :  { %2196 = vmatprep.subr.bf16.mxu0 %v2951_v16  ;;  %v1903_v16 = vld [vmem:[#allocation2 + $0x5b8] sm:$0xff] }
 0x1e1   :  { %2197 = vmatpush2.bf16.msra.mxu0 %v2950_v15  ;;  %v1902_v15 = vld [vmem:[#allocation2 + $0x598] sm:$0xff] }
 0x1e2   :  { %2198 = vmatprep.subr.bf16.mxu0 %v2949_v21  ;;  %v2975_v21 = vcombine.high %v1902_v15, %v1903_v16 }
 0x1e5   :  { %2199 = vmatpush2.bf16.msra.mxu0 %v2948_v20 }
 0x1e6   :  { %2200 = vmatprep.subr.bf16.mxu0 %v2947_v18  ;;  %v2973_v18 = vcombine.high %v1900_v22, %v1901_v23 }
 0x1e9   :  { %2201 = vmatpush2.bf16.msra.mxu0 %v2946_v24  ;;  %v2974_v24 = vcombine.low %v1902_v15, %v1903_v16 }
 0x1ec   :  { %2203 = vmatmul.mubr.bf16.vlgmr.msra.gmra.mxu0 %v3302_v26  ;;  %v1899_v26 = vld [vmem:[#allocation2 + $0x538] sm:$0xff] }
 0x206   :  { %v3054_v41 = vpop.f32.mrf.mxu1 }
 0x208   :  { %v3055_v44 = vpop.f32.mrf.mxu1 }
 0x209   :  { %v3527_v49 = vadd.f32 %v3055_v44, %v3054_v41 }
 0x20a   :  { %v3057_v58 = vpop.f32.mrf.mxu1 }
 0x20c   :  { %v3058_v51 = vpop.f32.mrf.mxu1 }
 0x20d   :  { %v3059_v0 = vadd.f32 %v3058_v51, %v3057_v58 }
 0x22a   :  { %v1656_v36 = vpop.f32.mrf.mxu1 }
 0x22c   :  { %v3032_v25 = vpop.f32.mrf.mxu0  ;;  %v1658_v39 = vpop.f32.mrf.mxu1 }
 0x22e   :  { %v3033_v27 = vpop.f32.mrf.mxu0  ;;  %v1660_v44 = vpop.f32.mrf.mxu1 }
 0x22f   :  { %v3034_v28 = vadd.f32 %v3033_v27, %v3032_v25  ;;  %v1898_v25 = vld [vmem:[#allocation2 + $0x518] sm:$0xff]  ;;  %v2972_v27 = vcombine.low %v1900_v22, %v1901_v23 }
 0x230   :  { %v3035_v29 = vpop.f32.mrf.mxu0  ;;  %v1662_v51 = vpop.f32.mrf.mxu1 }
 0x231   :  { %v3541_v30 = vadd.f32 %v3527_v49, %v3034_v28  ;;  %v2971_v28 = vcombine.high %v1898_v25, %v1899_v26 }
 0x232   :  { %v3036_v31 = vpop.f32.mrf.mxu0 }
 0x233   :  { %v3037_v32 = vadd.f32 %v3036_v31, %v3035_v29  ;;  %v1896_v29 = vld [vmem:[#allocation2 + $0x4d8] sm:$0xff] }
 0x234   :  { %v1897_v31 = vld [vmem:[#allocation2 + $0x4f8] sm:$0xff] }
 0x235   :  { %v3543_v33 = vadd.f32 %v3059_v0, %v3037_v32  ;;  %v2970_v32 = vcombine.low %v1898_v25, %v1899_v26  ;;  %v2969_v34 = vcombine.high %v1896_v29, %v1897_v31 }
 0x26c   :  { %v1613_v35 = vpop.f32.mrf.mxu0 }
 0x26d   :  { %v1614_v40 = vadd.f32 %v1613_v35, %v1322_v37  ;;  %v1890_v35 = vld [vmem:[#allocation2 + $0x418] sm:$0xff] }
 0x26e   :  { %v1615_v41 = vpop.f32.mrf.mxu0 }
 0x26f   :  { %v1657_v42 = vadd.f32 %v1656_v36, %v1614_v40  ;;  %v1616_v43 = vadd.f32 %v1615_v41, %v1326_v38  ;;  %v1892_v36 = vld [vmem:[#allocation2 + $0x458] sm:$0xff] }
 0x270   :  { %v1617_v45 = vpop.f32.mrf.mxu0  ;;  %v1891_v40 = vld [vmem:[#allocation2 + $0x438] sm:$0xff] }
 0x271   :  { %v1665_v46 = vmul.f32 0.5, %v1657_v42  ;;  %v1659_v49 = vadd.f32 %v1658_v39, %v1616_v43  ;;  %v1618_v55 = vadd.f32 %v1617_v45, %v1322_v37  ;;  %v1893_v37 = vld [vmem:[#allocation2 + $0x478] sm:$0xff]  ;;  %v2962_v45 = vcombine.low %v1890_v35, %v1891_v40 }
 0x272   :  { %v1619_v56 = vpop.f32.mrf.mxu0  ;;  %v2965_v39 = vcombine.high %v1892_v36, %v1893_v37  ;;  %v2964_v41 = vcombine.low %v1892_v36, %v1893_v37  ;;  %v1906_v43 = vld [vmem:[#allocation2 + $0x618] sm:$0xff] }
 0x273   :  { %v1666_v58 = vmul.f32 0.5, %v1659_v49  ;;  %v1661_v60 = vadd.f32 %v1660_v44, %v1618_v55  ;;  %v1620_v61 = vadd.f32 %v1619_v56, %v1326_v38  ;;  %3275 = vtanh.f32 %v1665_v46  ;;  %v1907_v44 = vld [vmem:[#allocation2 + $0x638] sm:$0xff] }
 0x274   :  { %v2966_v38 = vcombine.low %v1894_v62, %v1895_v53  ;;  %v2979_v46 = vcombine.high %v1906_v43, %v1907_v44  ;;  %v3227_v55 = vld [vmem:[#allocation5 + $0x1f8] sm:$0xff]  }
 0x275   :  { %3277 = vtanh.f32 %v1666_v58  ;;  %v1667_v52 = vmul.f32 0.5, %v1661_v60  ;;  %v1663_v0 = vadd.f32 %v1662_v51, %v1620_v61  ;;  %v3228_v56 = vld [vmem:[#allocation5 + $0x1b8] sm:$0xff]   ;;  %v3229_v58 = vld [vmem:[#allocation5 + $0x1f0] sm:$0xff]   ;;  %v3231_v61 = vld [vmem:[#allocation5 + $0x1e8] sm:$0xff]  }
 0x276   :  { %v3232_v51 = vld [vmem:[#allocation5 + $0x1a8] sm:$0xff]  }
 0x277   :  { %3279 = vtanh.f32 %v1667_v52  ;;  %v1668_v63 = vmul.f32 0.5, %v1663_v0  ;;  %v3233_v52 = vld [vmem:[#allocation5 + $0x1e0] sm:$0xff]  }
 0x279   :  { %3281 = vtanh.f32 %v1668_v63  ;;  %v3235_v63 = vld [vmem:[#allocation5 + $0x1d8] sm:$0xff]  }
 0x280   :  { %v3276_v4 = vpop.eup %3275 }
 0x281   :  { %v1673_v8 = vadd.f32 1.0, %v3276_v4  ;;  %v3236_v4 = vld [vmem:[#allocation5 + $0x198] sm:$0xff]  }
 0x282   :  { %v3278_v5 = vpop.eup %3277 }
 0x283   :  { %v1674_v6 = vadd.f32 1.0, %v3278_v5  ;;  %v1677_v50 = vmul.f32 0.5, %v1673_v8  ;;  %v3238_v5 = vld [vmem:[#allocation5 + $0x190] sm:$0xff]   ;;  %v3241_v8 = vld [vmem:[#allocation5 + $0x1c0] sm:$0xff]  }
 0x284   :  { %v3280_v7 = vpop.eup %3279 }
 0x285   :  { %v1675_v9 = vadd.f32 1.0, %v3280_v7  ;;  %v1678_v47 = vmul.f32 0.5, %v1674_v6  ;;  %v1681_v17 = vmul.f32 %v1677_v50, %v1657_v42  ;;  %v2963_v42 = vcombine.high %v1890_v35, %v1891_v40  ;;  %v3239_v6 = vld [vmem:[#allocation5 + $0x1c8] sm:$0xff]  }
 0x286   :  { %v3282_v10 = vpop.eup %3281  ;;  %v3240_v7 = vld [vmem:[#allocation5 + $0x188] sm:$0xff]  }
 0x287   :  { %v1679_v2 = vmul.f32 0.5, %v1675_v9  ;;  %v1676_v48 = vadd.f32 1.0, %v3282_v10  ;;  %v1682_v13 = vmul.f32 %v1678_v47, %v1659_v49  ;;  %v2978_v49 = vcombine.low %v1906_v43, %v1907_v44  ;;  %v3242_v9 = vld [vmem:[#allocation5 + $0x180] sm:$0xff]  }
 0x289   :  { %v1680_v11 = vmul.f32 0.5, %v1676_v48  ;;  %v1683_v12 = vmul.f32 %v1679_v2, %v1661_v60  ;;  %v3230_v60 = vld [vmem:[#allocation5 + $0x1b0] sm:$0xff]  }
 0x28b   :  { %v1684_v14 = vmul.f32 %v1680_v11, %v1663_v0  ;;  %v1685_v20 = vpack.c.bf16 %v1683_v12, %v1681_v17  ;;  %v3234_v0 = vld [vmem:[#allocation5 + $0x1a0] sm:$0xff]  }
 0x28d   :  { %v1686_v19 = vpack.c.bf16 %v1684_v14, %v1682_v13  ;;  %v1908_v14 = vld [vmem:[%s3649_s2 + $0x6] sm:$0x3] }
 0x28e   :  { %v1913_v16 = vrot.slane %v1908_v14, %v3482_v57 }
 0x28f   :  { %1847 = vmatprep.mubr.bf16.mxu1 %v1686_v19 }
 0x290   :  { %1848 = vmatmul.mubr.bf16.vlgmr.msra.gmra.mxu1 %v1685_v20  ;;  %v1917_v20 = vrot.slane %v1908_v14, %v3487_v59 }
 0x291   :  { %2214 = vmatpush1.bf16.msra.mxu1 %v2976_v3  ;;  %2980 = vmatprep.mubr.msk.bf16.mxu1 %vm397_vm0, %v3502_v54  ;;  %v2968_v3 = vcombine.low %v1896_v29, %v1897_v31  ;;  %v2967_v54 = vcombine.high %v1894_v62, %v1895_v53 }
 0x292   :  { %2215 = vmatprep.subr.bf16.mxu1 %v2975_v21 }
 0x295   :  { %2216 = vmatpush1.bf16.msra.mxu1 %v2974_v24 }
 0x296   :  { %2217 = vmatprep.subr.bf16.mxu1 %v2973_v18 }
 0x299   :  { %2218 = vmatpush1.bf16.msra.mxu1 %v2972_v27 }
 0x29a   :  { %2219 = vmatprep.subr.bf16.mxu1 %v2971_v28 }
 0x29d   :  { %2220 = vmatpush1.bf16.msra.mxu1 %v2970_v32 }
 0x29e   :  { %2221 = vmatprep.subr.bf16.mxu1 %v2969_v34 }
 0x2a1   :  { %2222 = vmatpush1.bf16.msra.mxu1 %v2968_v3 }
 0x2a2   :  { %2223 = vmatprep.subr.bf16.mxu1 %v2967_v54 }
 0x2a5   :  { %2224 = vmatpush1.bf16.msra.mxu1 %v2966_v38 }
 0x2a6   :  { %2225 = vmatprep.subr.bf16.mxu1 %v2965_v39 }
 0x2a9   :  { %2226 = vmatpush1.bf16.msra.mxu1 %v2964_v41 }
 0x2aa   :  { %2227 = vmatprep.subr.bf16.mxu1 %v2963_v42 }
 0x2ac   :  { %v2204_v15 = vpop.f32.mrf.mxu0 }
 0x2ad   :  { %2228 = vmatpush1.bf16.msra.mxu1 %v2962_v45  ;;  %v2205_v19 = vadd.f32 %v2204_v15, %v1913_v16 }
 0x2ae   :  { %2243 = vmatprep.subr.bf16.mxu1 %v2979_v46  ;;  %v2206_v17 = vpop.f32.mrf.mxu0 }
 0x2b0   :  { %v2208_v21 = vpop.f32.mrf.mxu0 }
 0x2b1   :  { %2244 = vmatpush2.bf16.msra.mxu1 %v2978_v49  ;;  %v2209_v25 = vadd.f32 %v2208_v21, %v1913_v16 }
 0x2b2   :  { %3082 = vmatprep.subr.bf16.mxu1 %v3227_v55  ;;  %v2210_v24 = vpop.f32.mrf.mxu0 }
 0x2b3   :  { %v2211_v28 = vadd.f32 %v2210_v24, %v1917_v20  ;;  %v3253_v24 = vld [vmem:[%s3654_s7 + $0x28] sm:$0xff]  }
 0x2b4   :  { %2246 = vmatmul.mubr.bf16.vlgmr.msra.gmra.mxu1 %v3513_v1  ;;  %v3237_v1 = vld [vmem:[#allocation5 + $0x1d0] sm:$0xff]  }
 0x2b5   :  { %3083 = vmatpush3.bf16.msra.mxu1 %v3228_v56  ;;  %v3243_v56 = vld [vmem:[%s3652_s5 + $0x38] sm:$0xff]  }
 0x2b6   :  { %3084 = vmatprep.subr.bf16.mxu1 %v3229_v58  ;;  %v3375_v58 = vmov 0.0  }
 0x2b7   :  { %3122 = vmatprep.subr.bf16.mxu0 %v3375_v58  ;;  %3138 = vmatprep.mubr.msk.bf16.mxu0 %vm3376_vm1, %v3375_v58 }
 0x2b8   :  { %3123 = vmatpush3.bf16.msra.mxu0 %v3243_v56 }
 0x2b9   :  { %3085 = vmatpush3.bf16.msra.mxu1 %v3230_v60  ;;  %3124 = vmatprep.subr.bf16.mxu0 %v3375_v58  ;;  %v3244_v60 = vld [vmem:[%s3652_s5 + $0x30] sm:$0xff]  }
 0x2ba   :  { %3086 = vmatprep.subr.bf16.mxu1 %v3231_v61  ;;  %v3245_v61 = vld [vmem:[%s3652_s5 + $0x28] sm:$0xff]  }
 0x2bc   :  { %3125 = vmatpush3.bf16.msra.mxu0 %v3244_v60 }
 0x2bd   :  { %3087 = vmatpush3.bf16.msra.mxu1 %v3232_v51  ;;  %3126 = vmatprep.subr.bf16.mxu0 %v3375_v58  ;;  %v3246_v51 = vld [vmem:[%s3652_s5 + $0x20] sm:$0xff]  }
 0x2be   :  { %3088 = vmatprep.subr.bf16.mxu1 %v3233_v52  ;;  %v3247_v52 = vld [vmem:[%s3652_s5 + $0x18] sm:$0xff]  }
 0x2c0   :  { %3127 = vmatpush3.bf16.msra.mxu0 %v3245_v61 }
 0x2c1   :  { %3089 = vmatpush3.bf16.msra.mxu1 %v3234_v0  ;;  %3128 = vmatprep.subr.bf16.mxu0 %v3375_v58  ;;  %v3248_v0 = vld [vmem:[%s3652_s5 + $0x10] sm:$0xff]  }
 0x2c2   :  { %3090 = vmatprep.subr.bf16.mxu1 %v3235_v63  ;;  %v3249_v63 = vld [vmem:[%s3652_s5 + $0x8] sm:$0xff]  }
 0x2c4   :  { %3129 = vmatpush3.bf16.msra.mxu0 %v3246_v51 }
 0x2c5   :  { %3091 = vmatpush3.bf16.msra.mxu1 %v3236_v4  ;;  %3130 = vmatprep.subr.bf16.mxu0 %v3375_v58  ;;  %v3250_v4 = vld [vmem:[%s3652_s5] sm:$0xff]  }
 0x2c6   :  { %3092 = vmatprep.subr.bf16.mxu1 %v3237_v1 }
 0x2c8   :  { %3131 = vmatpush3.bf16.msra.mxu0 %v3247_v52 }
 0x2c9   :  { %3093 = vmatpush3.bf16.msra.mxu1 %v3238_v5  ;;  %3132 = vmatprep.subr.bf16.mxu0 %v3375_v58 }
 0x2ca   :  { %3094 = vmatprep.subr.bf16.mxu1 %v3239_v6 }
 0x2cc   :  { %3133 = vmatpush3.bf16.msra.mxu0 %v3248_v0 }
 0x2cd   :  { %3095 = vmatpush3.bf16.msra.mxu1 %v3240_v7  ;;  %3134 = vmatprep.subr.bf16.mxu0 %v3375_v58  ;;  %v2997_v7 = vld [vmem:[%s3651_s4] ss:$0 sm:$0xff] }
 0x2ce   :  { %3096 = vmatprep.subr.bf16.mxu1 %v3241_v8 }
 0x2d0   :  { %3135 = vmatpush3.bf16.msra.mxu0 %v3249_v63 }
 0x2d1   :  { %3097 = vmatpush3.bf16.msra.mxu1 %v3242_v9  ;;  %3136 = vmatprep.subr.bf16.mxu0 %v3375_v58 }
 0x2d2   :  { %3142 = vmatprep.subr.bf16.mxu1 %v3375_v58 }
 0x2d4   :  { %3137 = vmatpush3.bf16.msra.mxu0 %v3250_v4 }
 0x350   :  { %v3076_v10 = vpop.f32.mrf.mxu1 }
 0x352   :  { %v3077_v47 = vpop.f32.mrf.mxu1 }
 0x353   :  { %v3078_v2 = vadd.f32 %v3077_v47, %v3076_v10 }
 0x354   :  { %v3079_v48 = vpop.f32.mrf.mxu1 }
 0x355   :  { %v3557_v50 = vadd.f32 %v3078_v2, %v3541_v30  ;;  %v2207_v30 = vadd.f32 %v2206_v17, %v1917_v20 }
 0x356   :  { %v3080_v11 = vpop.f32.mrf.mxu1 }
 0x357   :  { %v3081_v12 = vadd.f32 %v3080_v11, %v3079_v48 }
 0x359   :  { %v3560_v13 = vadd.f32 %v3081_v12, %v3543_v33 }
 0x374   :  { %v2247_v22 = vpop.f32.mrf.mxu1 }
 0x375   :  { %v2248_v23 = vadd.f32 %v2247_v22, %v2205_v19 }
 0x376   :  { %v2249_v18 = vpop.f32.mrf.mxu1 }
 0x377   :  { %v2256_v33 = vmul.f32 0.5, %v2248_v23  ;;  %v2250_v26 = vadd.f32 %v2249_v18, %v2207_v30  ;;  %v3254_v18 = vld [vmem:[%s3654_s7 + $0x20] sm:$0xff]  }
 0x378   :  { %v2251_v27 = vpop.f32.mrf.mxu1 }
 0x379   :  { %v2257_v29 = vmul.f32 0.5, %v2250_v26  ;;  %v2252_v31 = vadd.f32 %v2251_v27, %v2209_v25  ;;  %3283 = vtanh.f32 %v2256_v33  ;;  %v3255_v25 = vld [vmem:[%s3654_s7 + $0x18] sm:$0xff]   ;;  %v3256_v33 = vld [vmem:[%s3654_s7 + $0x10] sm:$0xff]   ;;  %v3258_v27 = vld [vmem:[%s3654_s7] sm:$0xff]  }
 0x37a   :  { %v2253_v32 = vpop.f32.mrf.mxu1 }
 0x37b   :  { %3285 = vtanh.f32 %v2257_v29  ;;  %v2258_v57 = vmul.f32 0.5, %v2252_v31  ;;  %v2254_v34 = vadd.f32 %v2253_v32, %v2211_v28  ;;  %v2998_v28 = vld [vmem:[%s3653_s6] ss:$0 sm:$0xff] }
 0x37d   :  { %3287 = vtanh.f32 %v2258_v57  ;;  %v2259_v59 = vmul.f32 0.5, %v2254_v34 }
 0x37f   :  { %3289 = vtanh.f32 %v2259_v59 }
 0x386   :  { %v3284_v62 = vpop.eup %3283 }
 0x387   :  { %v2264_v36 = vadd.f32 1.0, %v3284_v62 }
 0x388   :  { %v3286_v53 = vpop.eup %3285 }
 0x389   :  { %v2265_v3 = vadd.f32 1.0, %v3286_v53  ;;  %v2268_v41 = vmul.f32 0.5, %v2264_v36 }
 0x38a   :  { %v3288_v54 = vpop.eup %3287 }
 0x38b   :  { %v2266_v37 = vadd.f32 1.0, %v3288_v54  ;;  %v2269_v39 = vmul.f32 0.5, %v2265_v3  ;;  %v2272_v46 = vmul.f32 %v2268_v41, %v2248_v23 }
 0x38c   :  { %v3290_v38 = vpop.eup %3289 }
 0x38d   :  { %v2270_v35 = vmul.f32 0.5, %v2266_v37  ;;  %v2267_v40 = vadd.f32 1.0, %v3290_v38  ;;  %v2273_v44 = vmul.f32 %v2269_v39, %v2250_v26  ;;  %v3257_v26 = vld [vmem:[%s3654_s7 + $0x8] sm:$0xff]  }
 0x38f   :  { %v2271_v42 = vmul.f32 0.5, %v2267_v40  ;;  %v2274_v43 = vmul.f32 %v2270_v35, %v2252_v31 }
 0x391   :  { %v2275_v45 = vmul.f32 %v2271_v42, %v2254_v34  ;;  %v2276_v55 = vpack.c.bf16 %v2274_v43, %v2272_v46  ;;  %v3007_v42 = vld [vmem:[%s3655_s8] ss:$0 sm:$0xff] }
 0x393   :  { %v2277_v49 = vpack.c.bf16 %v2275_v45, %v2273_v44 }
 0x395   :  { %2438 = vmatprep.mubr.bf16.mxu1 %v2277_v49 }
 0x396   :  { %2439 = vmatmul.mubr.bf16.vlgmr.msra.gmra.mxu1 %v2276_v55 }
 0x397   :  { %3158 = vmatprep.mubr.msk.bf16.mxu1 %vm3376_vm1, %v3375_v58 }
 0x456   :  { %v3098_v1 = vpop.f32.mrf.mxu1 }
 0x458   :  { %v3099_v5 = vpop.f32.mrf.mxu1 }
 0x459   :  { %v3100_v6 = vadd.f32 %v3099_v5, %v3098_v1 }
 0x45a   :  { %v3101_v8 = vpop.f32.mrf.mxu1 }
 0x45b   :  { %v2447_v9 = vadd.f32 %v3100_v6, %v3557_v50  ;;  %v3251_v50 = vld [vmem:[%s3654_s7 + $0x38] sm:$0xff]  }
 0x45c   :  { %v3102_v10 = vpop.f32.mrf.mxu1  ;;  %3143 = vmatpush3.bf16.msra.mxu1 %v3251_v50 }
 0x45d   :  { %v2456_v47 = vadd.f32 %v2997_v7, %v2447_v9  ;;  %v3103_v2 = vadd.f32 %v3102_v10, %v3101_v8  ;;  %3144 = vmatprep.subr.bf16.mxu1 %v3375_v58 }
 0x45f   :  { %v2458_v48 = vmul.f32 0.5, %v2456_v47  ;;  %v2448_v11 = vadd.f32 %v3103_v2, %v3560_v13  ;;  %v3252_v13 = vld [vmem:[%s3654_s7 + $0x30] sm:$0xff]  }
 0x460   :  { %3145 = vmatpush3.bf16.msra.mxu1 %v3252_v13 }
 0x461   :  { %3291 = vtanh.f32 %v2458_v48  ;;  %v2457_v12 = vadd.f32 %v2997_v7, %v2448_v11  ;;  %3146 = vmatprep.subr.bf16.mxu1 %v3375_v58 }
 0x463   :  { %v2459_v14 = vmul.f32 0.5, %v2457_v12 }
 0x464   :  { %3147 = vmatpush3.bf16.msra.mxu1 %v3253_v24 }
 0x465   :  { %3293 = vtanh.f32 %v2459_v14  ;;  %3148 = vmatprep.subr.bf16.mxu1 %v3375_v58 }
 0x468   :  { %3149 = vmatpush3.bf16.msra.mxu1 %v3254_v18 }
 0x469   :  { %3150 = vmatprep.subr.bf16.mxu1 %v3375_v58 }
 0x46c   :  { %3151 = vmatpush3.bf16.msra.mxu1 %v3255_v25 }
 0x46d   :  { %3152 = vmatprep.subr.bf16.mxu1 %v3375_v58 }
 0x46e   :  { %v3292_v15 = vpop.eup %3291 }
 0x46f   :  { %v2462_v16 = vadd.f32 1.0, %v3292_v15 }
 0x470   :  { %3153 = vmatpush3.bf16.msra.mxu1 %v3256_v33 }
 0x471   :  { %v2464_v19 = vmul.f32 0.5, %v2462_v16  ;;  %3154 = vmatprep.subr.bf16.mxu1 %v3375_v58 }
 0x472   :  { %v3294_v17 = vpop.eup %3293 }
 0x473   :  { %v2463_v20 = vadd.f32 1.0, %v3294_v17  ;;  %v2466_v22 = vmul.f32 %v2464_v19, %v2456_v47 }
 0x474   :  { %3155 = vmatpush3.bf16.msra.mxu1 %v3257_v26 }
 0x475   :  { %v2465_v21 = vmul.f32 0.5, %v2463_v20  ;;  %3156 = vmatprep.subr.bf16.mxu1 %v3375_v58 }
 0x477   :  { %v2467_v30 = vmul.f32 %v2465_v21, %v2457_v12 }
 0x478   :  { %3157 = vmatpush3.bf16.msra.mxu1 %v3258_v27 }
 0x479   :  { %v2468_v23 = vpack.c.bf16 %v2467_v30, %v2466_v22 }
 0x47b   :  { %3139 = vmatmul.mubr.bf16.vlgmr.msra.gmra.mxu0 %v2468_v23 }
 0x53b   :  { %v2574_v29 = vpop.f32.mrf.mxu0 }
 0x53c   :  { %v2575_v31 = vadd.f32 %v2998_v28, %v2574_v29 }
 0x53d   :  { %v3140_v32 = vpop.f32.mrf.mxu0 }
 0x53e   :  { %v2581_v57 = vmul.f32 0.5, %v2575_v31 }
 0x53f   :  { %v2577_v34 = vpop.f32.mrf.mxu0 }
 0x540   :  { %3295 = vtanh.f32 %v2581_v57  ;;  %v2578_v59 = vadd.f32 %v2998_v28, %v2577_v34 }
 0x541   :  { %v3141_v62 = vpop.f32.mrf.mxu0 }
 0x542   :  { %v2582_v53 = vmul.f32 0.5, %v2578_v59 }
 0x544   :  { %3297 = vtanh.f32 %v2582_v53 }
 0x54d   :  { %v3296_v3 = vpop.eup %3295 }
 0x54e   :  { %v2585_v54 = vadd.f32 1.0, %v3296_v3 }
 0x550   :  { %v2587_v37 = vmul.f32 0.5, %v2585_v54 }
 0x551   :  { %v3298_v36 = vpop.eup %3297 }
 0x552   :  { %v2586_v38 = vadd.f32 1.0, %v3298_v36  ;;  %v2589_v35 = vmul.f32 %v2587_v37, %v2575_v31 }
 0x554   :  { %v2588_v39 = vmul.f32 0.5, %v2586_v38 }
 0x556   :  { %v2590_v40 = vmul.f32 %v2588_v39, %v2578_v59 }
 0x558   :  { %v2591_v41 = vpack.c.bf16 %v2590_v40, %v2589_v35 }
 0x55a   :  { %3159 = vmatmul.mubr.bf16.vlgmr.msra.gmra.mxu1 %v2591_v41 }
 0x61a   :  { %v2697_v43 = vpop.f32.mrf.mxu1 }
 0x61b   :  { %v2698_v44 = vadd.f32 %v3007_v42, %v2697_v43 }
 0x61c   :  { %v3160_v45 = vpop.f32.mrf.mxu1 }
 0x61d   :  { %2705 = vst.msk [vmem:[#allocation7] sm:$0xff] %vm2704_vm2, %v2698_v44 }
 0x61e   :  { %v2700_v46 = vpop.f32.mrf.mxu1 }
 0x61f   :  { %v2701_v49 = vadd.f32 %v3007_v42, %v2700_v46 }
 0x620   :  { %v3161_v55 = vpop.f32.mrf.mxu1 }
 0x621   :  { %2706 = vst.msk [vmem:[#allocation7 + $0x8] sm:$0xff] %vm2704_vm2, %v2701_v49 }
 0x622   :  { %3354 = shalt.err (!%p3351_p0)
}
 0x623   :  { %s3378_s8 = smov 128   ;;  %s3379_s11 = smov 8  }
 0x624   :  { %2718 = dma.vmem_to_hbm [thread:$0]  %s2713_s30, 256, %s3656_s9, [#allocation4], %s3378_s8, %s3378_s8, %s3379_s11  }
 0x625   :  { %3367 = dma.done.wait [#allocation4], 256  }
 0x626   :  { %3368 = vsyncadd [#allocation4], 4294967040 }
 0x627   :  { %2722 = vsyncpa [#allocation3], 1 }
 0x628   :  { %2723 = vsyncpa [#allocation6], 1 }
 0x629   :  { %2724 = vsyncpa [#allocation4], 1 }

</bundles_post_ra>
